<compile_context>
chip_gen: v6e
topology: v6e:2x2x1
jax: 0.10.0
libtpu: 0.0.40
codegen_flags: <defaults>
</compile_context>

<pallas_src>
import jax
import jax.numpy as jnp
from jax import lax
from jax.experimental import pallas as pl
from jax.experimental.pallas import tpu as pltpu


def _dwconv_kernel(x_ref, w_ref, b_ref, o_ref, xp_ref):
    # x_ref: (H, W, Cblk)  input tile (channels on lanes), original dtype
    # w_ref: (9, Cblk)     per-tap per-channel weights (VMEM, f32)
    # b_ref: (1, Cblk)     bias (VMEM, f32)
    # o_ref: (H, W, Cblk)  output tile
    # xp_ref: (H+2, W+2, Cblk) f32 scratch — zero-padded halo built in VMEM
    H, W, C = o_ref.shape
    f32 = jnp.float32

    # Zero only the halo border (the interior is fully overwritten below).
    # Re-done every step so correctness does not depend on scratch persistence
    # or grid-to-core assignment.
    xp_ref[0:1, :, :] = jnp.zeros((1, W + 2, C), f32)
    xp_ref[H + 1:H + 2, :, :] = jnp.zeros((1, W + 2, C), f32)
    xp_ref[:, 0:1, :] = jnp.zeros((H + 2, 1, C), f32)
    xp_ref[:, W + 1:W + 2, :] = jnp.zeros((H + 2, 1, C), f32)
    # Interior: single in-VMEM upcast+copy of the unpadded tile.
    xp_ref[1:H + 1, 1:W + 1, :] = x_ref[...].astype(f32)

    # Load all 9 weight rows / bias once per grid step.
    w = w_ref[...].astype(f32)      # (9, C)
    b = b_ref[...].astype(f32)      # (1, C)

    acc = jnp.zeros((H, W, C), f32)
    # 3x3 depthwise conv = 9 shifted multiply-accumulates. Shifts land on the
    # sublane / third-minor dims (H, W), never on the lane (C) axis.
    for k in range(9):
        ky, kx = k // 3, k % 3
        acc = acc + w[k] * xp_ref[ky:ky + H, kx:kx + W, :]

    o_ref[...] = (acc + b).astype(o_ref.dtype)


def dwconv(x, weight, bias):
    """Depthwise 3x3 conv, stride 1, padding 1, groups=C, with bias.

    x:      (N, C, H, W)  (PyTorch NCHW layout)
    weight: (C, 3, 3)     (nn.Conv2d depthwise weight (C, 1, 3, 3) squeezed)
    bias:   (C,)
    Returns (N, C, H, W).
    """
    N, C, H, W = x.shape
    LANES = 128

    # Channel blocking: use full 128-lane blocks whenever possible.
    if C % LANES == 0:
        c_pad, c_blk = C, LANES
    elif C < LANES:
        c_pad, c_blk = C, C                      # full-extent block (legal)
    else:
        c_pad = ((C + LANES - 1) // LANES) * LANES
        c_blk = LANES

    # Channels-last so C maps to the 128-lane axis. Keep activation dtype.
    x_nhwc = jnp.transpose(x, (0, 2, 3, 1))                 # (N, H, W, C)
    w_flat = jnp.transpose(weight.reshape(C, 9)).astype(jnp.float32)  # (9, C)
    b_row = bias.reshape(1, C).astype(jnp.float32)                    # (1, C)
    if c_pad != C:
        x_nhwc = jnp.pad(x_nhwc, ((0, 0), (0, 0), (0, 0), (0, c_pad - C)))
        w_flat = jnp.pad(w_flat, ((0, 0), (0, c_pad - C)))
        b_row = jnp.pad(b_row, ((0, 0), (0, c_pad - C)))

    grid = (N, c_pad // c_blk)

    out_nhwc = pl.pallas_call(
        _dwconv_kernel,
        out_shape=jax.ShapeDtypeStruct((N, H, W, c_pad), x.dtype),
        grid_spec=pltpu.PrefetchScalarGridSpec(
            num_scalar_prefetch=0,
            grid=grid,
            in_specs=[
                pl.BlockSpec((None, H, W, c_blk),
                             lambda n, cb: (n, 0, 0, cb)),     # input tile
                pl.BlockSpec((9, c_blk), lambda n, cb: (0, cb)),   # weights
                pl.BlockSpec((1, c_blk), lambda n, cb: (0, cb)),   # bias
            ],
            out_specs=pl.BlockSpec((None, H, W, c_blk),
                                   lambda n, cb: (n, 0, 0, cb)),
            scratch_shapes=[pltpu.VMEM((H + 2, W + 2, c_blk), jnp.float32)],
        ),
        compiler_params=pltpu.CompilerParams(
            dimension_semantics=("parallel", "parallel")),
    )(x_nhwc, w_flat, b_row)

    out_nhwc = out_nhwc[..., :C] if c_pad != C else out_nhwc
    return jnp.transpose(out_nhwc, (0, 3, 1, 2))             # back to NCHW


def _reference_dwconv(x, weight, bias):
    # Pure-JAX reference: depthwise conv via feature_group_count.
    C = x.shape[1]
    w = weight.reshape(C, 1, 3, 3)  # (O, I/g, kH, kW)
    out = lax.conv_general_dilated(
        x.astype(jnp.float32), w.astype(jnp.float32),
        window_strides=(1, 1), padding=((1, 1), (1, 1)),
        dimension_numbers=("NCHW", "OIHW", "NCHW"),
        feature_group_count=C)
    return out + bias.reshape(1, C, 1, 1)


if __name__ == "__main__":
    key = jax.random.PRNGKey(0)
    k_x, k_w, k_b = jax.random.split(key, 3)

    N, C, H, W = 2, 4, 16, 16
    x = jax.random.normal(k_x, (N, C, H, W), dtype=jnp.float32)

    # Deterministic parameter init (shapes match nn.Conv2d(ch, ch, 3, groups=ch)).
    fan_in = 1 * 3 * 3
    bound = 1.0 / (fan_in ** 0.5)
    weight = jax.random.uniform(k_w, (C, 3, 3), jnp.float32, -bound, bound)
    bias = jax.random.uniform(k_b, (C,), jnp.float32, -bound, bound)

    out = dwconv(x, weight, bias)
    out = jax.block_until_ready(out)

    ref = _reference_dwconv(x, weight, bias)
    assert out.shape == (N, C, H, W)
    assert jnp.allclose(out, ref.astype(out.dtype), atol=1e-5, rtol=1e-5)

    print("KERNEL_OK")
</pallas_src>

<mosaic_0001>
module attributes {stable_mosaic.version = 11 : i64} {
  func.func @_dwconv_kernel(%arg0: i32, %arg1: i32, %arg2: memref<1x16x16x4xf32, #tpu.memory_space<vmem>>, %arg3: memref<9x4xf32, #tpu.memory_space<vmem>>, %arg4: memref<1x4xf32, #tpu.memory_space<vmem>>, %arg5: memref<1x16x16x4xf32, #tpu.memory_space<vmem>>, %arg6: memref<18x18x4xf32, #tpu.memory_space<vmem>>) attributes {dimension_semantics = [#tpu.dimension_semantics<parallel>, #tpu.dimension_semantics<parallel>], iteration_bounds = array<i64: 2, 1>, scalar_prefetch = 0 : i64, scratch_operands = 1 : i64, tpu.core_type = #tpu.core_type<tc>, window_params = [{transform_indices = @transform_0, window_bounds = array<i64: 1, 16, 16, 4>}, {transform_indices = @transform_1, window_bounds = array<i64: 9, 4>}, {transform_indices = @transform_2, window_bounds = array<i64: 1, 4>}, {transform_indices = @transform_3, window_bounds = array<i64: 1, 16, 16, 4>}]} {
    %cst = arith.constant 0.000000e+00 : f32
    %0 = vector.broadcast %cst : f32 to vector<1x18x4xf32>
    %c0 = arith.constant 0 : index
    %c0_0 = arith.constant 0 : index
    %c0_1 = arith.constant 0 : index
    %1 = vector.load %arg6[%c0, %c0_0, %c0_1] : memref<18x18x4xf32, #tpu.memory_space<vmem>>, vector<1x18x4xf32>
    tpu.vector_store %arg6[%c0, %c0_0, %c0_1], %0 {strides = array<i32>} : memref<18x18x4xf32, #tpu.memory_space<vmem>>, vector<1x18x4xf32>,
    %cst_2 = arith.constant 0.000000e+00 : f32
    %2 = vector.broadcast %cst_2 : f32 to vector<1x18x4xf32>
    %c17 = arith.constant 17 : index
    %c0_3 = arith.constant 0 : index
    %c0_4 = arith.constant 0 : index
    %3 = vector.load %arg6[%c17, %c0_3, %c0_4] : memref<18x18x4xf32, #tpu.memory_space<vmem>>, vector<1x18x4xf32>
    tpu.vector_store %arg6[%c17, %c0_3, %c0_4], %2 {strides = array<i32>} : memref<18x18x4xf32, #tpu.memory_space<vmem>>, vector<1x18x4xf32>,
    %cst_5 = arith.constant 0.000000e+00 : f32
    %4 = vector.broadcast %cst_5 : f32 to vector<18x1x4xf32>
    %c0_6 = arith.constant 0 : index
    %c0_7 = arith.constant 0 : index
    %c0_8 = arith.constant 0 : index
    %5 = vector.load %arg6[%c0_6, %c0_7, %c0_8] : memref<18x18x4xf32, #tpu.memory_space<vmem>>, vector<18x1x4xf32>
    tpu.vector_store %arg6[%c0_6, %c0_7, %c0_8], %4 {strides = array<i32>} : memref<18x18x4xf32, #tpu.memory_space<vmem>>, vector<18x1x4xf32>,
    %cst_9 = arith.constant 0.000000e+00 : f32
    %6 = vector.broadcast %cst_9 : f32 to vector<18x1x4xf32>
    %c0_10 = arith.constant 0 : index
    %c17_11 = arith.constant 17 : index
    %c0_12 = arith.constant 0 : index
    %7 = vector.load %arg6[%c0_10, %c17_11, %c0_12] : memref<18x18x4xf32, #tpu.memory_space<vmem>>, vector<18x1x4xf32>
    tpu.vector_store %arg6[%c0_10, %c17_11, %c0_12], %6 {strides = array<i32>} : memref<18x18x4xf32, #tpu.memory_space<vmem>>, vector<18x1x4xf32>,
    %c0_13 = arith.constant 0 : index
    %c0_14 = arith.constant 0 : index
    %c0_15 = arith.constant 0 : index
    %c0_16 = arith.constant 0 : index
    %8 = vector.load %arg2[%c0_13, %c0_14, %c0_15, %c0_16] : memref<1x16x16x4xf32, #tpu.memory_space<vmem>>, vector<1x16x16x4xf32>
    %9 = vector.shape_cast %8 : vector<1x16x16x4xf32> to vector<16x16x4xf32>
    %c1 = arith.constant 1 : index
    %c1_17 = arith.constant 1 : index
    %c0_18 = arith.constant 0 : index
    %10 = vector.load %arg6[%c1, %c1_17, %c0_18] : memref<18x18x4xf32, #tpu.memory_space<vmem>>, vector<16x16x4xf32>
    tpu.vector_store %arg6[%c1, %c1_17, %c0_18], %9 {strides = array<i32>} : memref<18x18x4xf32, #tpu.memory_space<vmem>>, vector<16x16x4xf32>,
    %c0_19 = arith.constant 0 : index
    %c0_20 = arith.constant 0 : index
    %11 = vector.load %arg3[%c0_19, %c0_20] : memref<9x4xf32, #tpu.memory_space<vmem>>, vector<9x4xf32>
    %c0_21 = arith.constant 0 : index
    %c0_22 = arith.constant 0 : index
    %12 = vector.load %arg4[%c0_21, %c0_22] : memref<1x4xf32, #tpu.memory_space<vmem>>, vector<1x4xf32>
    %cst_23 = arith.constant 0.000000e+00 : f32
    %13 = vector.broadcast %cst_23 : f32 to vector<16x16x4xf32>
    %14 = vector.extract_strided_slice %11 {offsets = [0, 0], sizes = [1, 4], strides = [1, 1]} : vector<9x4xf32> to vector<1x4xf32>
    %15 = vector.shape_cast %14 : vector<1x4xf32> to vector<4xf32>
    %c0_24 = arith.constant 0 : index
    %c0_25 = arith.constant 0 : index
    %c0_26 = arith.constant 0 : index
    %16 = vector.load %arg6[%c0_24, %c0_25, %c0_26] : memref<18x18x4xf32, #tpu.memory_space<vmem>>, vector<16x16x4xf32>
    %17 = vector.shape_cast %15 : vector<4xf32> to vector<1x1x4xf32>
    %18 = vector.broadcast %17 : vector<1x1x4xf32> to vector<16x16x4xf32>
    %19 = arith.mulf %18, %16 : vector<16x16x4xf32>
    %20 = arith.addf %13, %19 : vector<16x16x4xf32>
    %21 = vector.extract_strided_slice %11 {offsets = [1, 0], sizes = [1, 4], strides = [1, 1]} : vector<9x4xf32> to vector<1x4xf32>
    %22 = vector.shape_cast %21 : vector<1x4xf32> to vector<4xf32>
    %c0_27 = arith.constant 0 : index
    %c1_28 = arith.constant 1 : index
    %c0_29 = arith.constant 0 : index
    %23 = vector.load %arg6[%c0_27, %c1_28, %c0_29] : memref<18x18x4xf32, #tpu.memory_space<vmem>>, vector<16x16x4xf32>
    %24 = vector.shape_cast %22 : vector<4xf32> to vector<1x1x4xf32>
    %25 = vector.broadcast %24 : vector<1x1x4xf32> to vector<16x16x4xf32>
    %26 = arith.mulf %25, %23 : vector<16x16x4xf32>
    %27 = arith.addf %20, %26 : vector<16x16x4xf32>
    %28 = vector.extract_strided_slice %11 {offsets = [2, 0], sizes = [1, 4], strides = [1, 1]} : vector<9x4xf32> to vector<1x4xf32>
    %29 = vector.shape_cast %28 : vector<1x4xf32> to vector<4xf32>
    %c0_30 = arith.constant 0 : index
    %c2 = arith.constant 2 : index
    %c0_31 = arith.constant 0 : index
    %30 = vector.load %arg6[%c0_30, %c2, %c0_31] : memref<18x18x4xf32, #tpu.memory_space<vmem>>, vector<16x16x4xf32>
    %31 = vector.shape_cast %29 : vector<4xf32> to vector<1x1x4xf32>
    %32 = vector.broadcast %31 : vector<1x1x4xf32> to vector<16x16x4xf32>
    %33 = arith.mulf %32, %30 : vector<16x16x4xf32>
    %34 = arith.addf %27, %33 : vector<16x16x4xf32>
    %35 = vector.extract_strided_slice %11 {offsets = [3, 0], sizes = [1, 4], strides = [1, 1]} : vector<9x4xf32> to vector<1x4xf32>
    %36 = vector.shape_cast %35 : vector<1x4xf32> to vector<4xf32>
    %c1_32 = arith.constant 1 : index
    %c0_33 = arith.constant 0 : index
    %c0_34 = arith.constant 0 : index
    %37 = vector.load %arg6[%c1_32, %c0_33, %c0_34] : memref<18x18x4xf32, #tpu.memory_space<vmem>>, vector<16x16x4xf32>
    %38 = vector.shape_cast %36 : vector<4xf32> to vector<1x1x4xf32>
    %39 = vector.broadcast %38 : vector<1x1x4xf32> to vector<16x16x4xf32>
    %40 = arith.mulf %39, %37 : vector<16x16x4xf32>
    %41 = arith.addf %34, %40 : vector<16x16x4xf32>
    %42 = vector.extract_strided_slice %11 {offsets = [4, 0], sizes = [1, 4], strides = [1, 1]} : vector<9x4xf32> to vector<1x4xf32>
    %43 = vector.shape_cast %42 : vector<1x4xf32> to vector<4xf32>
    %c1_35 = arith.constant 1 : index
    %c1_36 = arith.constant 1 : index
    %c0_37 = arith.constant 0 : index
    %44 = vector.load %arg6[%c1_35, %c1_36, %c0_37] : memref<18x18x4xf32, #tpu.memory_space<vmem>>, vector<16x16x4xf32>
    %45 = vector.shape_cast %43 : vector<4xf32> to vector<1x1x4xf32>
    %46 = vector.broadcast %45 : vector<1x1x4xf32> to vector<16x16x4xf32>
    %47 = arith.mulf %46, %44 : vector<16x16x4xf32>
    %48 = arith.addf %41, %47 : vector<16x16x4xf32>
    %49 = vector.extract_strided_slice %11 {offsets = [5, 0], sizes = [1, 4], strides = [1, 1]} : vector<9x4xf32> to vector<1x4xf32>
    %50 = vector.shape_cast %49 : vector<1x4xf32> to vector<4xf32>
    %c1_38 = arith.constant 1 : index
    %c2_39 = arith.constant 2 : index
    %c0_40 = arith.constant 0 : index
    %51 = vector.load %arg6[%c1_38, %c2_39, %c0_40] : memref<18x18x4xf32, #tpu.memory_space<vmem>>, vector<16x16x4xf32>
    %52 = vector.shape_cast %50 : vector<4xf32> to vector<1x1x4xf32>
    %53 = vector.broadcast %52 : vector<1x1x4xf32> to vector<16x16x4xf32>
    %54 = arith.mulf %53, %51 : vector<16x16x4xf32>
    %55 = arith.addf %48, %54 : vector<16x16x4xf32>
    %56 = vector.extract_strided_slice %11 {offsets = [6, 0], sizes = [1, 4], strides = [1, 1]} : vector<9x4xf32> to vector<1x4xf32>
    %57 = vector.shape_cast %56 : vector<1x4xf32> to vector<4xf32>
    %c2_41 = arith.constant 2 : index
    %c0_42 = arith.constant 0 : index
    %c0_43 = arith.constant 0 : index
    %58 = vector.load %arg6[%c2_41, %c0_42, %c0_43] : memref<18x18x4xf32, #tpu.memory_space<vmem>>, vector<16x16x4xf32>
    %59 = vector.shape_cast %57 : vector<4xf32> to vector<1x1x4xf32>
    %60 = vector.broadcast %59 : vector<1x1x4xf32> to vector<16x16x4xf32>
    %61 = arith.mulf %60, %58 : vector<16x16x4xf32>
    %62 = arith.addf %55, %61 : vector<16x16x4xf32>
    %63 = vector.extract_strided_slice %11 {offsets = [7, 0], sizes = [1, 4], strides = [1, 1]} : vector<9x4xf32> to vector<1x4xf32>
    %64 = vector.shape_cast %63 : vector<1x4xf32> to vector<4xf32>
    %c2_44 = arith.constant 2 : index
    %c1_45 = arith.constant 1 : index
    %c0_46 = arith.constant 0 : index
    %65 = vector.load %arg6[%c2_44, %c1_45, %c0_46] : memref<18x18x4xf32, #tpu.memory_space<vmem>>, vector<16x16x4xf32>
    %66 = vector.shape_cast %64 : vector<4xf32> to vector<1x1x4xf32>
    %67 = vector.broadcast %66 : vector<1x1x4xf32> to vector<16x16x4xf32>
    %68 = arith.mulf %67, %65 : vector<16x16x4xf32>
    %69 = arith.addf %62, %68 : vector<16x16x4xf32>
    %70 = vector.extract_strided_slice %11 {offsets = [8, 0], sizes = [1, 4], strides = [1, 1]} : vector<9x4xf32> to vector<1x4xf32>
    %71 = vector.shape_cast %70 : vector<1x4xf32> to vector<4xf32>
    %c2_47 = arith.constant 2 : index
    %c2_48 = arith.constant 2 : index
    %c0_49 = arith.constant 0 : index
    %72 = vector.load %arg6[%c2_47, %c2_48, %c0_49] : memref<18x18x4xf32, #tpu.memory_space<vmem>>, vector<16x16x4xf32>
    %73 = vector.shape_cast %71 : vector<4xf32> to vector<1x1x4xf32>
    %74 = vector.broadcast %73 : vector<1x1x4xf32> to vector<16x16x4xf32>
    %75 = arith.mulf %74, %72 : vector<16x16x4xf32>
    %76 = arith.addf %69, %75 : vector<16x16x4xf32>
    %77 = vector.shape_cast %12 : vector<1x4xf32> to vector<1x1x4xf32>
    %78 = vector.broadcast %77 : vector<1x1x4xf32> to vector<16x16x4xf32>
    %79 = arith.addf %76, %78 : vector<16x16x4xf32>
    %c0_50 = arith.constant 0 : index
    %c0_51 = arith.constant 0 : index
    %c0_52 = arith.constant 0 : index
    %c0_53 = arith.constant 0 : index
    %80 = vector.load %arg5[%c0_50, %c0_51, %c0_52, %c0_53] : memref<1x16x16x4xf32, #tpu.memory_space<vmem>>, vector<1x16x16x4xf32>
    %81 = vector.shape_cast %80 : vector<1x16x16x4xf32> to vector<16x16x4xf32>
    %82 = vector.shape_cast %79 : vector<16x16x4xf32> to vector<1x16x16x4xf32>
    tpu.vector_store %arg5[%c0_50, %c0_51, %c0_52, %c0_53], %82 {strides = array<i32>} : memref<1x16x16x4xf32, #tpu.memory_space<vmem>>, vector<1x16x16x4xf32>,
    return
  }
  func.func @transform_0(%arg0: i32, %arg1: i32) -> (i32, i32, i32, i32) {
    %c0_i32 = arith.constant 0 : i32
    %c0_i32_0 = arith.constant 0 : i32
    %c0_i32_1 = arith.constant 0 : i32
    return %arg0, %c0_i32, %c0_i32_0, %arg1 : i32, i32, i32, i32
  }
  func.func @transform_1(%arg0: i32, %arg1: i32) -> (i32, i32) {
    %c0_i32 = arith.constant 0 : i32
    %c0_i32_0 = arith.constant 0 : i32
    return %c0_i32, %arg1 : i32, i32
  }
  func.func @transform_2(%arg0: i32, %arg1: i32) -> (i32, i32) {
    %c0_i32 = arith.constant 0 : i32
    %c0_i32_0 = arith.constant 0 : i32
    return %c0_i32, %arg1 : i32, i32
  }
  func.func @transform_3(%arg0: i32, %arg1: i32) -> (i32, i32, i32, i32) {
    %c0_i32 = arith.constant 0 : i32
    %c0_i32_0 = arith.constant 0 : i32
    %c0_i32_1 = arith.constant 0 : i32
    return %arg0, %c0_i32, %c0_i32_0, %arg1 : i32, i32, i32, i32
  }
}

</mosaic_0001>

<bundles_post_ra>
// kernel: tpu_custom_call.1
= control target key start
LH: loop header
LB: loop body
LE: loop exit
PB: predicated region body
PF: predicated region fallthrough
CT: control target
= control target key end

     0   :  { %s1518_s12 = smov 0   ;;  %s1520_s13 = smov 0   ;;  %s2165_s0 = inlined_call_operand.vmem [shape: f32[2,16,16,4], index: 0, kind: input, shape index: {}]   ;;  %s2166_s1 = inlined_call_operand.vmem [shape: f32[9,4], index: 1, kind: input, shape index: {}]   ;;  %s2167_s2 = inlined_call_operand.vmem [shape: f32[1,4], index: 2, kind: input, shape index: {}]   ;;  %s2168_s3 = inlined_call_operand.vmem [shape: f32[2,16,16,4], index: 3, kind: output, shape index: {}]  }
   0x1   :  { %s1522_s14 = smov 0  }
   0x2 LB: > { %s25_s15 = sadd.s32 1, %s1491_s13  ;;  %p1435_p0 = scmp.ge.s32.totalorder %s1495_s14, 1  ;;  %s1495_s14 = sphi %s1522_s14, %s13_s14   ;;  %s1491_s13 = sphi %s1520_s13, %s2170_s13   ;;  %s1487_s12 = sphi %s1518_s12, %s2169_s12  }
   0x3   : > { %p27_p1 = scmp.ge.s32.totalorder %s25_s15, 2  ;;  %p173_p2 = scmp.lt.s32.totalorder %s1495_s14, 3 }
   0x5   : > { %s2172_s15 = smov (%p27_p1, %s25_s15), 0  ;;  %p174_p3 = pnand %p1435_p0, %p173_p2 }
   0x6   : > { %p210_p4 = scmp.lt.s32.totalorder (!%p174_p3), %s1487_s12, 1 }
   0x7   : > { %177 = sbr.rel (%p174_p3) target bundleno = 197 (0xc5), region = 32 }
   0xc   : > { %vm233_vm0 = vcmask 31744   ;;  %vm236_vm1 = vcmask 25600   ;;  %vm242_vm2 = vcmask 24576   ;;  %v1497_v0 = vmov 0.0   ;;  %s2174_s12 = smov (!%p210_p4, %s1487_s12), 1  ;;  %v1612_v12 = vld [vmem:[%s2166_s1] sm:$0xff] }
   0xd   : > { %234 = vst.msk [vmem:[#allocation2] sm:$0xff] %vm233_vm0, %v1497_v0  ;;  %235 = vst.msk [vmem:[#allocation2 + $0x8] sm:$0xff] %vm233_vm0, %v1497_v0  ;;  %v379_v1 = vlaneseq  ;;  %s1444_s16 = sshll.u32 %s2174_s12, 8  ;;  %v1696_v59 = vld [vmem:[%s2166_s1 + $0x8] ss:$0 sm:$0xff] }
   0xe   : > { %239 = vst.msk [vmem:[#allocation2 + $0x198] sm:$0xff] %vm233_vm0, %v1497_v0  ;;  %240 = vst.msk [vmem:[#allocation2 + $0x1a0] sm:$0xff] %vm233_vm0, %v1497_v0  ;;  %s1590_s19 = scalar_lea.vmem %s2165_s0, %s1444_s16  ;;  %s1763_s28 = scalar_lea.vmem %s2168_s3, %s1444_s16 }
   0xf   : > { %237 = vst.msk [vmem:[#allocation2 + $0x10] sm:$0x3] %vm236_vm1, %v1497_v0  ;;  %241 = vst.msk [vmem:[#allocation2 + $0x1a8] sm:$0x3] %vm236_vm1, %v1497_v0  ;;  %v1592_v2 = vshrl.u32 %v379_v1, 7  ;;  %v279_v3 = vld [vmem:[%s1590_s19] sm:$0xff] }
  0x10   : > { %244 = vst.msk [vmem:[#allocation2 + $0x18] sm:$0x1] %vm242_vm2, %v1497_v0  ;;  %245 = vst.msk [vmem:[#allocation2 + $0x30] sm:$0x1] %vm242_vm2, %v1497_v0  ;;  %v280_v4 = vld [vmem:[%s1590_s19 + $0x8] sm:$0xff]  ;;  %v281_v5 = vld [vmem:[%s1590_s19 + $0x10] sm:$0xff] }
  0x11   : > { %246 = vst.msk [vmem:[#allocation2 + $0x48] sm:$0x1] %vm242_vm2, %v1497_v0  ;;  %247 = vst.msk [vmem:[#allocation2 + $0x60] sm:$0x1] %vm242_vm2, %v1497_v0  ;;  %v282_v6 = vld [vmem:[%s1590_s19 + $0x18] sm:$0xff]  ;;  %v283_v7 = vld [vmem:[%s1590_s19 + $0x20] sm:$0xff] }
  0x12   : > { %248 = vst.msk [vmem:[#allocation2 + $0x78] sm:$0x1] %vm242_vm2, %v1497_v0  ;;  %249 = vst.msk [vmem:[#allocation2 + $0x90] sm:$0x1] %vm242_vm2, %v1497_v0  ;;  %v284_v8 = vld [vmem:[%s1590_s19 + $0x28] sm:$0xff]  ;;  %v285_v9 = vld [vmem:[%s1590_s19 + $0x30] sm:$0xff] }
  0x13   : > { %250 = vst.msk [vmem:[#allocation2 + $0xa8] sm:$0x1] %vm242_vm2, %v1497_v0  ;;  %251 = vst.msk [vmem:[#allocation2 + $0xc0] sm:$0x1] %vm242_vm2, %v1497_v0  ;;  %v286_v10 = vld [vmem:[%s1590_s19 + $0x38] sm:$0xff]  ;;  %v287_v11 = vld [vmem:[%s1590_s19 + $0x40] sm:$0xff] }
  0x14   : > { %252 = vst.msk [vmem:[#allocation2 + $0xd8] sm:$0x1] %vm242_vm2, %v1497_v0  ;;  %253 = vst.msk [vmem:[#allocation2 + $0xf0] sm:$0x1] %vm242_vm2, %v1497_v0  ;;  %v288_v13 = vld [vmem:[%s1590_s19 + $0x48] sm:$0xff]  ;;  %v289_v14 = vld [vmem:[%s1590_s19 + $0x50] sm:$0xff] }
  0x15   : > { %254 = vst.msk [vmem:[#allocation2 + $0x108] sm:$0x1] %vm242_vm2, %v1497_v0  ;;  %255 = vst.msk [vmem:[#allocation2 + $0x120] sm:$0x1] %vm242_vm2, %v1497_v0  ;;  %v290_v15 = vld [vmem:[%s1590_s19 + $0x58] sm:$0xff]  ;;  %v381_v16 = vsub.s32 0, %v1592_v2 }
  0x16   : > { %256 = vst.msk [vmem:[#allocation2 + $0x138] sm:$0x1] %vm242_vm2, %v1497_v0  ;;  %257 = vst.msk [vmem:[#allocation2 + $0x150] sm:$0x1] %vm242_vm2, %v1497_v0  ;;  %v291_v17 = vld [vmem:[%s1590_s19 + $0x60] sm:$0xff]  ;;  %v292_v18 = vld [vmem:[%s1590_s19 + $0x68] sm:$0xff] }
  0x17   : > { %258 = vst.msk [vmem:[#allocation2 + $0x168] sm:$0x1] %vm242_vm2, %v1497_v0  ;;  %259 = vst.msk [vmem:[#allocation2 + $0x180] sm:$0x1] %vm242_vm2, %v1497_v0  ;;  %v293_v19 = vld [vmem:[%s1590_s19 + $0x70] sm:$0xff]  ;;  %v481_v20 = vsub.s32 1, %v1592_v2  ;;  %v1649_v32 = vrot.slane %v1612_v12, %v381_v16 }
  0x18   : > { %262 = vst.msk [vmem:[#allocation2 + $0x29] sm:$0x1] %vm242_vm2, %v1497_v0  ;;  %263 = vst.msk [vmem:[#allocation2 + $0x41] sm:$0x1] %vm242_vm2, %v1497_v0  ;;  %v581_v21 = vsub.s32 2, %v1592_v2  ;;  %v294_v22 = vld [vmem:[%s1590_s19 + $0x78] sm:$0xff] }
  0x19   : > { %264 = vst.msk [vmem:[#allocation2 + $0x59] sm:$0x1] %vm242_vm2, %v1497_v0  ;;  %265 = vst.msk [vmem:[#allocation2 + $0x71] sm:$0x1] %vm242_vm2, %v1497_v0  ;;  %v295_v23 = vld [vmem:[%s1590_s19 + $0x80] sm:$0xff]  ;;  %v296_v24 = vld [vmem:[%s1590_s19 + $0x88] sm:$0xff]  ;;  %v1659_v37 = vrot.slane %v1612_v12, %v481_v20 }
  0x1a   : > { %266 = vst.msk [vmem:[#allocation2 + $0x89] sm:$0x1] %vm242_vm2, %v1497_v0  ;;  %267 = vst.msk [vmem:[#allocation2 + $0xa1] sm:$0x1] %vm242_vm2, %v1497_v0  ;;  %v297_v25 = vld [vmem:[%s1590_s19 + $0x90] sm:$0xff]  ;;  %v298_v26 = vld [vmem:[%s1590_s19 + $0x98] sm:$0xff]  ;;  %v1662_v38 = vrot.slane %v1612_v12, %v581_v21 }
  0x1b   : > { %268 = vst.msk [vmem:[#allocation2 + $0xb9] sm:$0x1] %vm242_vm2, %v1497_v0  ;;  %269 = vst.msk [vmem:[#allocation2 + $0xd1] sm:$0x1] %vm242_vm2, %v1497_v0  ;;  %v299_v27 = vld [vmem:[%s1590_s19 + $0xa0] sm:$0xff]  ;;  %v681_v28 = vsub.s32 3, %v1592_v2 }
  0x1c   : > { %270 = vst.msk [vmem:[#allocation2 + $0xe9] sm:$0x1] %vm242_vm2, %v1497_v0  ;;  %271 = vst.msk [vmem:[#allocation2 + $0x101] sm:$0x1] %vm242_vm2, %v1497_v0  ;;  %v300_v29 = vld [vmem:[%s1590_s19 + $0xa8] sm:$0xff]  ;;  %v301_v30 = vld [vmem:[%s1590_s19 + $0xb0] sm:$0xff] }
  0x1d   : > { %272 = vst.msk [vmem:[#allocation2 + $0x119] sm:$0x1] %vm242_vm2, %v1497_v0  ;;  %273 = vst.msk [vmem:[#allocation2 + $0x131] sm:$0x1] %vm242_vm2, %v1497_v0  ;;  %v302_v31 = vld [vmem:[%s1590_s19 + $0xb8] sm:$0xff]  ;;  %v781_v33 = vsub.s32 4, %v1592_v2  ;;  %v1678_v47 = vrot.slane %v1612_v12, %v681_v28 }
  0x1e   : > { %274 = vst.msk [vmem:[#allocation2 + $0x149] sm:$0x1] %vm242_vm2, %v1497_v0  ;;  %275 = vst.msk [vmem:[#allocation2 + $0x161] sm:$0x1] %vm242_vm2, %v1497_v0  ;;  %v303_v34 = vld [vmem:[%s1590_s19 + $0xc0] sm:$0xff]  ;;  %v304_v35 = vld [vmem:[%s1590_s19 + $0xc8] sm:$0xff] }
  0x1f   : > { %276 = vst.msk [vmem:[#allocation2 + $0x179] sm:$0x1] %vm242_vm2, %v1497_v0  ;;  %277 = vst.msk [vmem:[#allocation2 + $0x191] sm:$0x1] %vm242_vm2, %v1497_v0  ;;  %v305_v36 = vld [vmem:[%s1590_s19 + $0xd0] sm:$0xff]  ;;  %v881_v39 = vsub.s32 5, %v1592_v2  ;;  %v1685_v53 = vrot.slane %v1612_v12, %v781_v33 }
  0x20   : > { %243 = vst.msk [vmem:[#allocation2] sm:$0x1] %vm242_vm2, %v1497_v0  ;;  %260 = vst.msk [vmem:[#allocation2 + $0x198] sm:$0x1] %vm242_vm2, %v1497_v0  ;;  %v306_v40 = vld [vmem:[%s1590_s19 + $0xd8] sm:$0xff]  ;;  %v307_v41 = vld [vmem:[%s1590_s19 + $0xe0] sm:$0xff] }
  0x21   : > { %261 = vst.msk [vmem:[#allocation2 + $0x11] sm:$0x1] %vm242_vm2, %v1497_v0  ;;  %278 = vst.msk [vmem:[#allocation2 + $0x1a9] sm:$0x1] %vm242_vm2, %v1497_v0  ;;  %v308_v42 = vld [vmem:[%s1590_s19 + $0xe8] sm:$0xff]  ;;  %v982_v43 = vsub.s32 6, %v1592_v2  ;;  %v1690_v57 = vrot.slane %v1612_v12, %v881_v39 }
  0x22   : > { %312 = vst.msk [vmem:[#allocation2 + $0x19] sm:$0xff] %vm233_vm0, %v279_v3  ;;  %313 = vst.msk [vmem:[#allocation2 + $0x21] sm:$0xff] %vm233_vm0, %v280_v4  ;;  %v309_v44 = vld [vmem:[%s1590_s19 + $0xf0] sm:$0xff]  ;;  %v310_v45 = vld [vmem:[%s1590_s19 + $0xf8] sm:$0xff]  ;;  %v1082_v48 = vsub.s32 7, %v1592_v2 }
  0x23   : > { %314 = vst.msk [vmem:[#allocation2 + $0x31] sm:$0xff] %vm233_vm0, %v281_v5  ;;  %315 = vst.msk [vmem:[#allocation2 + $0x39] sm:$0xff] %vm233_vm0, %v282_v6  ;;  %v447_v50 = vld [vmem:[#allocation2 + $0x1] sm:$0xff]  ;;  %v1699_v62 = vrot.slane %v1612_v12, %v982_v43  ;;  %v448_v5 = vld [vmem:[#allocation2 + $0x9] sm:$0xff] }
  0x24   : > { %316 = vst.msk [vmem:[#allocation2 + $0x49] sm:$0xff] %vm233_vm0, %v283_v7  ;;  %317 = vst.msk [vmem:[#allocation2 + $0x51] sm:$0xff] %vm233_vm0, %v284_v8  ;;  %v547_v51 = vld [vmem:[#allocation2 + $0x2] sm:$0xff]  ;;  %v483_v54 = vmul.f32 %v1659_v37, %v447_v50  ;;  %v1704_v3 = vrot.slane %v1612_v12, %v1082_v48 }
  0x25   : > { %318 = vst.msk [vmem:[#allocation2 + $0x61] sm:$0xff] %vm233_vm0, %v285_v9  ;;  %319 = vst.msk [vmem:[#allocation2 + $0x69] sm:$0xff] %vm233_vm0, %v286_v10  ;;  %v583_v55 = vmul.f32 %v1662_v38, %v547_v51  ;;  %v348_v63 = vld [vmem:[#allocation2 + $0x8] sm:$0xff]  ;;  %v484_v10 = vmul.f32 %v1659_v37, %v448_v5 }
  0x26   : > { %320 = vst.msk [vmem:[#allocation2 + $0x79] sm:$0xff] %vm233_vm0, %v287_v11  ;;  %321 = vst.msk [vmem:[#allocation2 + $0x81] sm:$0xff] %vm233_vm0, %v288_v13  ;;  %v384_v4 = vmul.f32 %v1649_v32, %v348_v63 }
  0x27   : > { %322 = vst.msk [vmem:[#allocation2 + $0x91] sm:$0xff] %vm233_vm0, %v289_v14  ;;  %323 = vst.msk [vmem:[#allocation2 + $0x99] sm:$0xff] %vm233_vm0, %v290_v15  ;;  %v347_v46 = vld [vmem:[#allocation2] sm:$0xff] }
  0x28   : > { %324 = vst.msk [vmem:[#allocation2 + $0xa9] sm:$0xff] %vm233_vm0, %v291_v17  ;;  %325 = vst.msk [vmem:[#allocation2 + $0xb1] sm:$0xff] %vm233_vm0, %v292_v18  ;;  %v383_v49 = vmul.f32 %v1649_v32, %v347_v46  ;;  %v548_v6 = vld [vmem:[#allocation2 + $0xa] sm:$0xff] }
  0x29   : > { %326 = vst.msk [vmem:[#allocation2 + $0xc1] sm:$0xff] %vm233_vm0, %v293_v19  ;;  %327 = vst.msk [vmem:[#allocation2 + $0xc9] sm:$0xff] %vm233_vm0, %v294_v22  ;;  %v647_v52 = vld [vmem:[#allocation2 + $0x18] sm:$0xff]  ;;  %v648_v7 = vld [vmem:[#allocation2 + $0x20] sm:$0xff]  ;;  %v584_v11 = vmul.f32 %v1662_v38, %v548_v6  ;;  %v516_v19 = vadd.f32 %v484_v10, %v384_v4 }
  0x2a   : > { %328 = vst.msk [vmem:[#allocation2 + $0xd9] sm:$0xff] %vm233_vm0, %v295_v23  ;;  %329 = vst.msk [vmem:[#allocation2 + $0xe1] sm:$0xff] %vm233_vm0, %v296_v24  ;;  %v747_v56 = vld [vmem:[#allocation2 + $0x19] sm:$0xff]  ;;  %v385_v58 = vmul.f32 %v647_v52, %v1649_v32  ;;  %v948_v61 = vld [vmem:[#allocation2 + $0x30] sm:$0xff]  ;;  %v515_v1 = vadd.f32 %v483_v54, %v383_v49  ;;  %v683_v2 = vmul.f32 %v1678_v47, %v647_v52 }
  0x2b   : > { %330 = vst.msk [vmem:[#allocation2 + $0xf1] sm:$0xff] %vm233_vm0, %v297_v25  ;;  %331 = vst.msk [vmem:[#allocation2 + $0xf9] sm:$0xff] %vm233_vm0, %v298_v26  ;;  %v847_v60 = vld [vmem:[#allocation2 + $0x1a] sm:$0xff]  ;;  %v485_v0 = vmul.f32 %v747_v56, %v1659_v37  ;;  %v1048_v8 = vld [vmem:[#allocation2 + $0x31] sm:$0xff]  ;;  %v783_v16 = vmul.f32 %v1685_v53, %v747_v56  ;;  %v984_v18 = vmul.f32 %v1699_v62, %v948_v61 }
  0x2c   : > { %332 = vst.msk [vmem:[#allocation2 + $0x109] sm:$0xff] %vm233_vm0, %v299_v27  ;;  %333 = vst.msk [vmem:[#allocation2 + $0x111] sm:$0xff] %vm233_vm0, %v300_v29  ;;  %v1148_v9 = vld [vmem:[#allocation2 + $0x32] sm:$0xff]  ;;  %v748_v13 = vld [vmem:[#allocation2 + $0x21] sm:$0xff]  ;;  %v615_v15 = vadd.f32 %v583_v55, %v515_v1  ;;  %v883_v17 = vmul.f32 %v1690_v57, %v847_v60  ;;  %v684_v20 = vmul.f32 %v1678_v47, %v648_v7 }
  0x2d   : > { %334 = vst.msk [vmem:[#allocation2 + $0x121] sm:$0xff] %vm233_vm0, %v301_v30  ;;  %335 = vst.msk [vmem:[#allocation2 + $0x129] sm:$0xff] %vm233_vm0, %v302_v31  ;;  %v517_v14 = vadd.f32 %v485_v0, %v385_v58  ;;  %v848_v12 = vld [vmem:[#allocation2 + $0x22] sm:$0xff]  ;;  %v949_v21 = vld [vmem:[#allocation2 + $0x38] sm:$0xff]  ;;  %v585_v22 = vmul.f32 %v847_v60, %v1662_v38  ;;  %v1084_v24 = vmul.f32 %v1704_v3, %v1048_v8 }
  0x2e   : > { %336 = vst.msk [vmem:[#allocation2 + $0x139] sm:$0xff] %vm233_vm0, %v303_v34  ;;  %337 = vst.msk [vmem:[#allocation2 + $0x141] sm:$0xff] %vm233_vm0, %v304_v35  ;;  %v715_v23 = vadd.f32 %v683_v2, %v615_v15  ;;  %v1184_v25 = vmul.f32 %v1696_v59, %v1148_v9  ;;  %v784_v26 = vmul.f32 %v1685_v53, %v748_v13  ;;  %v1049_v27 = vld [vmem:[#allocation2 + $0x39] sm:$0xff]  ;;  %v1730_v48 = vld [vmem:[#allocation2 + $0x49] sm:$0xff] }
  0x2f   : > { %338 = vst.msk [vmem:[#allocation2 + $0x151] sm:$0xff] %vm233_vm0, %v305_v36  ;;  %339 = vst.msk [vmem:[#allocation2 + $0x159] sm:$0xff] %vm233_vm0, %v306_v40  ;;  %v616_v28 = vadd.f32 %v584_v11, %v516_v19  ;;  %v884_v29 = vmul.f32 %v1690_v57, %v848_v12  ;;  %v1718_v30 = vld [vmem:[#allocation2 + $0x3a] sm:$0xff]  ;;  %v617_v31 = vadd.f32 %v585_v22, %v517_v14  ;;  %v1722_v36 = vld [vmem:[#allocation2 + $0x48] sm:$0xff] }
  0x30   : > { %340 = vst.msk [vmem:[#allocation2 + $0x169] sm:$0xff] %vm233_vm0, %v307_v41  ;;  %341 = vst.msk [vmem:[#allocation2 + $0x171] sm:$0xff] %vm233_vm0, %v308_v42  ;;  %v685_v33 = vmul.f32 %v948_v61, %v1678_v47  ;;  %v815_v34 = vadd.f32 %v783_v16, %v715_v23  ;;  %v985_v35 = vmul.f32 %v1699_v62, %v949_v21  ;;  %v1736_v56 = vld [vmem:[#allocation2 + $0x4a] sm:$0xff] }
  0x31   : > { %342 = vst.msk [vmem:[#allocation2 + $0x181] sm:$0xff] %vm233_vm0, %v309_v44  ;;  %343 = vst.msk [vmem:[#allocation2 + $0x189] sm:$0xff] %vm233_vm0, %v310_v45  ;;  %v386_v39 = vmul.f32 %v648_v7, %v1649_v32  ;;  %v486_v40 = vmul.f32 %v748_v13, %v1659_v37  ;;  %v716_v41 = vadd.f32 %v684_v20, %v616_v28  ;;  %v1742_v5 = vld [vmem:[#allocation2 + $0x50] sm:$0xff] }
  0x32   : > { %v1085_v42 = vmul.f32 %v1704_v3, %v1049_v27  ;;  %v717_v43 = vadd.f32 %v685_v33, %v617_v31  ;;  %v785_v44 = vmul.f32 %v1048_v8, %v1685_v53  ;;  %v915_v45 = vadd.f32 %v883_v17, %v815_v34  ;;  %v1051_v23 = vld [vmem:[#allocation2 + $0x51] sm:$0xff] }
  0x33   : > { %v1185_v46 = vmul.f32 %v1696_v59, %v1718_v30  ;;  %v518_v49 = vadd.f32 %v486_v40, %v386_v39  ;;  %v586_v50 = vmul.f32 %v848_v12, %v1662_v38  ;;  %v816_v51 = vadd.f32 %v784_v26, %v716_v41  ;;  %v1151_v34 = vld [vmem:[#allocation2 + $0x52] sm:$0xff] }
  0x34   : > { %v817_v52 = vadd.f32 %v785_v44, %v717_v43  ;;  %v885_v54 = vmul.f32 %v1148_v9, %v1690_v57  ;;  %v986_v55 = vmul.f32 %v1699_v62, %v1722_v36  ;;  %v1016_v58 = vadd.f32 %v984_v18, %v915_v45 }
  0x35   : > { %v618_v60 = vadd.f32 %v586_v50, %v518_v49  ;;  %v686_v63 = vmul.f32 %v949_v21, %v1678_v47  ;;  %v387_v0 = vmul.f32 %v948_v61, %v1649_v32  ;;  %v916_v1 = vadd.f32 %v884_v29, %v816_v51  ;;  %v1751_v61 = vld [vmem:[%s2167_s2] ss:$0 sm:$0xff]  ;;  %v1052_v51 = vld [vmem:[#allocation2 + $0x61] sm:$0xff] }
  0x36   : > { %v917_v2 = vadd.f32 %v885_v54, %v817_v52  ;;  %v1086_v4 = vmul.f32 %v1704_v3, %v1730_v48  ;;  %v487_v6 = vmul.f32 %v1048_v8, %v1659_v37  ;;  %v1116_v7 = vadd.f32 %v1084_v24, %v1016_v58  ;;  %v1152_v58 = vld [vmem:[#allocation2 + $0x62] sm:$0xff] }
  0x37   : > { %v1186_v10 = vmul.f32 %v1696_v59, %v1736_v56  ;;  %v718_v11 = vadd.f32 %v686_v63, %v618_v60  ;;  %v786_v13 = vmul.f32 %v1049_v27, %v1685_v53  ;;  %v1017_v14 = vadd.f32 %v985_v35, %v916_v1 }
  0x38   : > { %v1018_v15 = vadd.f32 %v986_v55, %v917_v2  ;;  %v519_v16 = vadd.f32 %v487_v6, %v387_v0  ;;  %v587_v17 = vmul.f32 %v1148_v9, %v1662_v38  ;;  %v1216_v12 = vadd.f32 %v1184_v25, %v1116_v7  ;;  %v953_v7 = vld [vmem:[#allocation2 + $0x68] sm:$0xff] }
  0x39   : > { %v818_v18 = vadd.f32 %v786_v13, %v718_v11  ;;  %v886_v8 = vmul.f32 %v1718_v30, %v1690_v57  ;;  %v987_v19 = vmul.f32 %v1699_v62, %v1742_v5  ;;  %v1117_v20 = vadd.f32 %v1085_v42, %v1017_v14  ;;  %v952_v42 = vld [vmem:[#allocation2 + $0x60] sm:$0xff] }
  0x3a   : > { %v1118_v22 = vadd.f32 %v1086_v4, %v1018_v15  ;;  %v619_v24 = vadd.f32 %v587_v17, %v519_v16  ;;  %v687_v9 = vmul.f32 %v1722_v36, %v1678_v47  ;;  %v1254_v25 = vadd.f32 %v1751_v61, %v1216_v12  ;;  %v1153_v16 = vld [vmem:[#allocation2 + $0x6a] sm:$0xff] }
  0x3b   : > { %v918_v26 = vadd.f32 %v886_v8, %v818_v18  ;;  %v388_v28 = vmul.f32 %v949_v21, %v1649_v32  ;;  %v488_v29 = vmul.f32 %v1049_v27, %v1659_v37  ;;  %v1217_v31 = vadd.f32 %v1185_v46, %v1117_v20 }
  0x3c   : > { %v1218_v33 = vadd.f32 %v1186_v10, %v1118_v22  ;;  %v719_v35 = vadd.f32 %v687_v9, %v619_v24  ;;  %v787_v39 = vmul.f32 %v1730_v48, %v1685_v53  ;;  %1286 = vst.msk [vmem:[%s1763_s28] sm:$0xff] %vm233_vm0, %v1254_v25  ;;  %v1087_v41 = vmul.f32 %v1704_v3, %v1051_v23  ;;  %v1053_v10 = vld [vmem:[#allocation2 + $0x69] sm:$0xff]  ;;  %v954_v22 = vld [vmem:[#allocation2 + $0x78] sm:$0xff] }
  0x3d   : > { %v1019_v40 = vadd.f32 %v987_v19, %v918_v26  ;;  %v520_v43 = vadd.f32 %v488_v29, %v388_v28  ;;  %v588_v21 = vmul.f32 %v1718_v30, %v1662_v38  ;;  %v1255_v27 = vadd.f32 %v1751_v61, %v1217_v31  ;;  %v1054_v31 = vld [vmem:[#allocation2 + $0x79] sm:$0xff] }
  0x3e   : > { %v1256_v44 = vadd.f32 %v1751_v61, %v1218_v33  ;;  %v819_v45 = vadd.f32 %v787_v39, %v719_v35  ;;  %v887_v46 = vmul.f32 %v1736_v56, %v1690_v57  ;;  %v1187_v50 = vmul.f32 %v1696_v59, %v1151_v34  ;;  %v1811_v33 = vld [vmem:[#allocation2 + $0x7a] sm:$0xff] }
  0x3f   : > { %v1119_v49 = vadd.f32 %v1087_v41, %v1019_v40  ;;  %v620_v52 = vadd.f32 %v588_v21, %v520_v43  ;;  %v688_v54 = vmul.f32 %v1742_v5, %v1678_v47  ;;  %1287 = vst.msk [vmem:[%s1763_s28 + $0x8] sm:$0xff] %vm233_vm0, %v1255_v27  ;;  %v988_v55 = vmul.f32 %v1699_v62, %v952_v42 }
  0x40   : > { %1288 = vst.msk [vmem:[%s1763_s28 + $0x10] sm:$0xff] %vm233_vm0, %v1256_v44  ;;  %v919_v30 = vadd.f32 %v887_v46, %v819_v45  ;;  %v389_v60 = vmul.f32 %v1722_v36, %v1649_v32  ;;  %v489_v63 = vmul.f32 %v1730_v48, %v1659_v37  ;;  %v788_v2 = vmul.f32 %v1051_v23, %v1685_v53 }
  0x41   : > { %v1219_v0 = vadd.f32 %v1187_v50, %v1119_v49  ;;  %v720_v1 = vadd.f32 %v688_v54, %v620_v52  ;;  %v1088_v6 = vmul.f32 %v1704_v3, %v1052_v51  ;;  %v589_v13 = vmul.f32 %v1736_v56, %v1662_v38 }
  0x42   : > { %v1020_v4 = vadd.f32 %v988_v55, %v919_v30  ;;  %v521_v11 = vadd.f32 %v489_v63, %v389_v60  ;;  %v1188_v36 = vmul.f32 %v1696_v59, %v1152_v58  ;;  %v888_v48 = vmul.f32 %v1151_v34, %v1690_v57  ;;  %v955_v30 = vld [vmem:[#allocation2 + $0x80] sm:$0xff] }
  0x43   : > { %v1257_v14 = vadd.f32 %v1751_v61, %v1219_v0  ;;  %v820_v15 = vadd.f32 %v788_v2, %v720_v1  ;;  %v689_v18 = vmul.f32 %v952_v42, %v1678_v47  ;;  %v390_v8 = vmul.f32 %v1742_v5, %v1649_v32 }
  0x44   : > { %v1120_v17 = vadd.f32 %v1088_v6, %v1020_v4  ;;  %v621_v12 = vadd.f32 %v589_v13, %v521_v11  ;;  %v989_v56 = vmul.f32 %v1699_v62, %v953_v7  ;;  %v1089_v20 = vmul.f32 %v1704_v3, %v1053_v10  ;;  %v1155_v6 = vld [vmem:[#allocation2 + $0x82] sm:$0xff] }
  0x45   : > { %1289 = vst.msk [vmem:[%s1763_s28 + $0x18] sm:$0xff] %vm233_vm0, %v1257_v14  ;;  %v920_v19 = vadd.f32 %v888_v48, %v820_v15  ;;  %v490_v24 = vmul.f32 %v1051_v23, %v1659_v37  ;;  %v1189_v25 = vmul.f32 %v1696_v59, %v1153_v16  ;;  %v789_v28 = vmul.f32 %v1052_v51, %v1685_v53 }
  0x46   : > { %v1220_v9 = vadd.f32 %v1188_v36, %v1120_v17  ;;  %v721_v26 = vadd.f32 %v689_v18, %v621_v12  ;;  %v889_v5 = vmul.f32 %v1152_v58, %v1690_v57  ;;  %v590_v39 = vmul.f32 %v1151_v34, %v1662_v38  ;;  %v956_v12 = vld [vmem:[#allocation2 + $0x90] sm:$0xff] }
  0x47   : > { %v1021_v29 = vadd.f32 %v989_v56, %v920_v19  ;;  %v522_v35 = vadd.f32 %v490_v24, %v390_v8  ;;  %v990_v23 = vmul.f32 %v1699_v62, %v954_v22  ;;  %v391_v43 = vmul.f32 %v952_v42, %v1649_v32  ;;  %v1055_v42 = vld [vmem:[#allocation2 + $0x81] sm:$0xff] }
  0x48   : > { %v1258_v40 = vadd.f32 %v1751_v61, %v1220_v9  ;;  %v821_v41 = vadd.f32 %v789_v28, %v721_v26  ;;  %v690_v44 = vmul.f32 %v953_v7, %v1678_v47  ;;  %v491_v45 = vmul.f32 %v1052_v51, %v1659_v37 }
  0x49   : > { %v1121_v21 = vadd.f32 %v1089_v20, %v1021_v29  ;;  %v622_v27 = vadd.f32 %v590_v39, %v522_v35  ;;  %v1090_v49 = vmul.f32 %v1704_v3, %v1054_v31  ;;  %v1190_v34 = vmul.f32 %v1696_v59, %v1811_v33  ;;  %v1845_v35 = vld [vmem:[#allocation2 + $0x98] sm:$0xff] }
  0x4a   : > { %1290 = vst.msk [vmem:[%s1763_s28 + $0x20] sm:$0xff] %vm233_vm0, %v1258_v40  ;;  %v921_v46 = vadd.f32 %v889_v5, %v821_v41  ;;  %v790_v50 = vmul.f32 %v1053_v10, %v1685_v53  ;;  %v523_v55 = vadd.f32 %v491_v45, %v391_v43  ;;  %v591_v60 = vmul.f32 %v1152_v58, %v1662_v38 }
  0x4b   : > { %v1221_v52 = vadd.f32 %v1189_v25, %v1121_v21  ;;  %v722_v54 = vadd.f32 %v690_v44, %v622_v27  ;;  %v890_v51 = vmul.f32 %v1153_v16, %v1690_v57  ;;  %v691_v0 = vmul.f32 %v954_v22, %v1678_v47  ;;  %v1156_v25 = vld [vmem:[#allocation2 + $0x92] sm:$0xff] }
  0x4c   : > { %v1022_v63 = vadd.f32 %v990_v23, %v921_v46  ;;  %v392_v1 = vmul.f32 %v953_v7, %v1649_v32  ;;  %v623_v11 = vadd.f32 %v591_v60, %v523_v55  ;;  %v492_v13 = vmul.f32 %v1053_v10, %v1659_v37  ;;  %v1056_v7 = vld [vmem:[#allocation2 + $0x91] sm:$0xff]  ;;  %v1057_v27 = vld [vmem:[#allocation2 + $0x99] sm:$0xff] }
  0x4d   : > { %v1259_v2 = vadd.f32 %v1751_v61, %v1221_v52  ;;  %v822_v4 = vadd.f32 %v790_v50, %v722_v54  ;;  %v991_v36 = vmul.f32 %v1699_v62, %v955_v30  ;;  %v1091_v15 = vmul.f32 %v1704_v3, %v1055_v42  ;;  %v1157_v50 = vld [vmem:[#allocation2 + $0x9a] sm:$0xff] }
  0x4e   : > { %v1122_v14 = vadd.f32 %v1090_v49, %v1022_v63  ;;  %v791_v58 = vmul.f32 %v1054_v31, %v1685_v53  ;;  %v723_v17 = vadd.f32 %v691_v0, %v623_v11  ;;  %v524_v18 = vadd.f32 %v492_v13, %v392_v1 }
  0x4f   : > { %1291 = vst.msk [vmem:[%s1763_s28 + $0x28] sm:$0xff] %vm233_vm0, %v1259_v2  ;;  %v922_v48 = vadd.f32 %v890_v51, %v822_v4  ;;  %v592_v8 = vmul.f32 %v1153_v16, %v1662_v38  ;;  %v1191_v56 = vmul.f32 %v1696_v59, %v1155_v6  ;;  %v891_v10 = vmul.f32 %v1811_v33, %v1690_v57  ;;  %v958_v4 = vld [vmem:[#allocation2 + $0xa8] sm:$0xff] }
  0x50   : > { %v1222_v19 = vadd.f32 %v1190_v34, %v1122_v14  ;;  %v692_v20 = vmul.f32 %v955_v30, %v1678_v47  ;;  %v823_v9 = vadd.f32 %v791_v58, %v723_v17  ;;  %v393_v28 = vmul.f32 %v954_v22, %v1649_v32 }
  0x51   : > { %v1023_v24 = vadd.f32 %v991_v36, %v922_v48  ;;  %v624_v26 = vadd.f32 %v592_v8, %v524_v18  ;;  %v992_v5 = vmul.f32 %v1699_v62, %v956_v12  ;;  %v1092_v16 = vmul.f32 %v1704_v3, %v1056_v7  ;;  %v1158_v48 = vld [vmem:[#allocation2 + $0xaa] sm:$0xff] }
  0x52   : > { %v1260_v29 = vadd.f32 %v1751_v61, %v1222_v19  ;;  %v493_v39 = vmul.f32 %v1054_v31, %v1659_v37  ;;  %v923_v41 = vadd.f32 %v891_v10, %v823_v9  ;;  %v792_v43 = vmul.f32 %v1055_v42, %v1685_v53 }
  0x53   : > { %v1123_v40 = vadd.f32 %v1091_v15, %v1023_v24  ;;  %v724_v23 = vadd.f32 %v692_v20, %v624_v26  ;;  %v1192_v21 = vmul.f32 %v1696_v59, %v1156_v25  ;;  %v892_v22 = vmul.f32 %v1155_v6, %v1690_v57  ;;  %v1058_v15 = vld [vmem:[#allocation2 + $0xa9] sm:$0xff] }
  0x54   : > { %1292 = vst.msk [vmem:[%s1763_s28 + $0x30] sm:$0xff] %vm233_vm0, %v1260_v29  ;;  %v525_v44 = vadd.f32 %v493_v39, %v393_v28  ;;  %v593_v45 = vmul.f32 %v1811_v33, %v1662_v38  ;;  %v1024_v49 = vadd.f32 %v992_v5, %v923_v41  ;;  %v993_v31 = vmul.f32 %v1699_v62, %v1845_v35  ;;  %v959_v5 = vld [vmem:[#allocation2 + $0xb0] sm:$0xff] }
  0x55   : > { %v1223_v46 = vadd.f32 %v1191_v56, %v1123_v40  ;;  %v824_v34 = vadd.f32 %v792_v43, %v724_v23  ;;  %v693_v54 = vmul.f32 %v956_v12, %v1678_v47  ;;  %v394_v55 = vmul.f32 %v955_v30, %v1649_v32 }
  0x56   : > { %v625_v52 = vadd.f32 %v593_v45, %v525_v44  ;;  %v494_v60 = vmul.f32 %v1055_v42, %v1659_v37  ;;  %v1124_v51 = vadd.f32 %v1092_v16, %v1024_v49  ;;  %v1093_v33 = vmul.f32 %v1704_v3, %v1057_v27 }
  0x57   : > { %v1261_v63 = vadd.f32 %v1751_v61, %v1223_v46  ;;  %v924_v0 = vadd.f32 %v892_v22, %v824_v34  ;;  %v793_v2 = vmul.f32 %v1056_v7, %v1685_v53  ;;  %v594_v13 = vmul.f32 %v1155_v6, %v1662_v38 }
  0x58   : > { %v725_v1 = vadd.f32 %v693_v54, %v625_v52  ;;  %v526_v11 = vadd.f32 %v494_v60, %v394_v55  ;;  %v1224_v14 = vadd.f32 %v1192_v21, %v1124_v51  ;;  %v1193_v30 = vmul.f32 %v1696_v59, %v1157_v50  ;;  %v1159_v21 = vld [vmem:[#allocation2 + $0xb2] sm:$0xff]  ;;  %v960_v54 = vld [vmem:[#allocation2 + $0xc0] sm:$0xff] }
  0x59   : > { %1293 = vst.msk [vmem:[%s1763_s28 + $0x38] sm:$0xff] %vm233_vm0, %v1261_v63  ;;  %v1025_v36 = vadd.f32 %v993_v31, %v924_v0  ;;  %v893_v42 = vmul.f32 %v1156_v25, %v1690_v57  ;;  %v694_v18 = vmul.f32 %v1845_v35, %v1678_v47  ;;  %v395_v8 = vmul.f32 %v956_v12, %v1649_v32  ;;  %v1059_v12 = vld [vmem:[#allocation2 + $0xb1] sm:$0xff]  ;;  %v1060_v0 = vld [vmem:[#allocation2 + $0xc1] sm:$0xff] }
  0x5a   : > { %v825_v58 = vadd.f32 %v793_v2, %v725_v1  ;;  %v626_v17 = vadd.f32 %v594_v13, %v526_v11  ;;  %v1262_v6 = vadd.f32 %v1751_v61, %v1224_v14  ;;  %v994_v56 = vmul.f32 %v1699_v62, %v958_v4  ;;  %v1160_v1 = vld [vmem:[#allocation2 + $0xc2] sm:$0xff] }
  0x5b   : > { %v1125_v19 = vadd.f32 %v1093_v33, %v1025_v36  ;;  %v495_v10 = vmul.f32 %v1056_v7, %v1659_v37  ;;  %v1094_v24 = vmul.f32 %v1704_v3, %v1058_v15  ;;  %v794_v26 = vmul.f32 %v1057_v27, %v1685_v53 }
  0x5c   : > { %v925_v20 = vadd.f32 %v893_v42, %v825_v58  ;;  %v726_v9 = vadd.f32 %v694_v18, %v626_v17  ;;  %1294 = vst.msk [vmem:[%s1763_s28 + $0x40] sm:$0xff] %vm233_vm0, %v1262_v6  ;;  %v1194_v29 = vmul.f32 %v1696_v59, %v1158_v48  ;;  %v595_v39 = vmul.f32 %v1156_v25, %v1662_v38 }
  0x5d   : > { %v1225_v28 = vadd.f32 %v1193_v30, %v1125_v19  ;;  %v527_v16 = vadd.f32 %v495_v10, %v395_v8  ;;  %v894_v7 = vmul.f32 %v1157_v50, %v1690_v57  ;;  %v695_v23 = vmul.f32 %v958_v4, %v1678_v47  ;;  %v961_v19 = vld [vmem:[#allocation2 + $0xc8] sm:$0xff] }
  0x5e   : > { %v1026_v40 = vadd.f32 %v994_v56, %v925_v20  ;;  %v826_v41 = vadd.f32 %v794_v26, %v726_v9  ;;  %v396_v44 = vmul.f32 %v1845_v35, %v1649_v32  ;;  %v496_v45 = vmul.f32 %v1057_v27, %v1659_v37 }
  0x5f   : > { %v1263_v43 = vadd.f32 %v1751_v61, %v1225_v28  ;;  %v627_v22 = vadd.f32 %v595_v39, %v527_v16  ;;  %v995_v34 = vmul.f32 %v1699_v62, %v959_v5  ;;  %v1095_v25 = vmul.f32 %v1704_v3, %v1059_v12  ;;  %v1161_v28 = vld [vmem:[#allocation2 + $0xca] sm:$0xff] }
  0x60   : > { %v1126_v46 = vadd.f32 %v1094_v24, %v1026_v40  ;;  %v926_v49 = vadd.f32 %v894_v7, %v826_v41  ;;  %v795_v52 = vmul.f32 %v1058_v15, %v1685_v53  ;;  %v528_v55 = vadd.f32 %v496_v45, %v396_v44 }
  0x61   : > { %1295 = vst.msk [vmem:[%s1763_s28 + $0x48] sm:$0xff] %vm233_vm0, %v1263_v43  ;;  %v727_v31 = vadd.f32 %v695_v23, %v627_v22  ;;  %v596_v60 = vmul.f32 %v1157_v50, %v1662_v38  ;;  %v1195_v35 = vmul.f32 %v1696_v59, %v1159_v21  ;;  %v895_v27 = vmul.f32 %v1158_v48, %v1690_v57  ;;  %v962_v22 = vld [vmem:[#allocation2 + $0xd8] sm:$0xff] }
  0x62   : > { %v1226_v63 = vadd.f32 %v1194_v29, %v1126_v46  ;;  %v1027_v51 = vadd.f32 %v995_v34, %v926_v49  ;;  %v696_v11 = vmul.f32 %v959_v5, %v1678_v47  ;;  %v397_v13 = vmul.f32 %v958_v4, %v1649_v32  ;;  %v1061_v4 = vld [vmem:[#allocation2 + $0xc9] sm:$0xff]  ;;  %v1062_v34 = vld [vmem:[#allocation2 + $0xd9] sm:$0xff] }
  0x63   : > { %v827_v33 = vadd.f32 %v795_v52, %v727_v31  ;;  %v628_v2 = vadd.f32 %v596_v60, %v528_v55  ;;  %v996_v50 = vmul.f32 %v1699_v62, %v960_v54  ;;  %v497_v30 = vmul.f32 %v1058_v15, %v1659_v37  ;;  %v1162_v31 = vld [vmem:[#allocation2 + $0xda] sm:$0xff] }
  0x64   : > { %v1264_v14 = vadd.f32 %v1751_v61, %v1226_v63  ;;  %v1127_v36 = vadd.f32 %v1095_v25, %v1027_v51  ;;  %v1096_v58 = vmul.f32 %v1704_v3, %v1060_v0  ;;  %v796_v18 = vmul.f32 %v1059_v12, %v1685_v53 }
  0x65   : > { %v927_v42 = vadd.f32 %v895_v27, %v827_v33  ;;  %v728_v17 = vadd.f32 %v696_v11, %v628_v2  ;;  %v1196_v6 = vmul.f32 %v1696_v59, %v1160_v1  ;;  %v529_v56 = vadd.f32 %v497_v30, %v397_v13 }
  0x66   : > { %1296 = vst.msk [vmem:[%s1763_s28 + $0x50] sm:$0xff] %vm233_vm0, %v1264_v14  ;;  %v1227_v8 = vadd.f32 %v1195_v35, %v1127_v36  ;;  %v597_v10 = vmul.f32 %v1158_v48, %v1662_v38  ;;  %v896_v15 = vmul.f32 %v1159_v21, %v1690_v57  ;;  %v697_v9 = vmul.f32 %v960_v54, %v1678_v47  ;;  %v963_v36 = vld [vmem:[#allocation2 + $0xe0] sm:$0xff] }
  0x67   : > { %v1028_v20 = vadd.f32 %v996_v50, %v927_v42  ;;  %v828_v24 = vadd.f32 %v796_v18, %v728_v17  ;;  %v398_v16 = vmul.f32 %v959_v5, %v1649_v32  ;;  %v498_v39 = vmul.f32 %v1059_v12, %v1659_v37 }
  0x68   : > { %v1265_v26 = vadd.f32 %v1751_v61, %v1227_v8  ;;  %v629_v29 = vadd.f32 %v597_v10, %v529_v56  ;;  %v997_v7 = vmul.f32 %v1699_v62, %v961_v19  ;;  %v1097_v48 = vmul.f32 %v1704_v3, %v1061_v4  ;;  %v1163_v8 = vld [vmem:[#allocation2 + $0xe2] sm:$0xff] }
  0x69   : > { %v1128_v40 = vadd.f32 %v1096_v58, %v1028_v20  ;;  %v928_v41 = vadd.f32 %v896_v15, %v828_v24  ;;  %v797_v43 = vmul.f32 %v1060_v0, %v1685_v53  ;;  %v530_v44 = vadd.f32 %v498_v39, %v398_v16 }
  0x6a   : > { %1297 = vst.msk [vmem:[%s1763_s28 + $0x58] sm:$0xff] %vm233_vm0, %v1265_v26  ;;  %v729_v23 = vadd.f32 %v697_v9, %v629_v29  ;;  %v598_v45 = vmul.f32 %v1159_v21, %v1662_v38  ;;  %v1197_v5 = vmul.f32 %v1696_v59, %v1161_v28  ;;  %v897_v12 = vmul.f32 %v1160_v1, %v1690_v57  ;;  %v964_v29 = vld [vmem:[#allocation2 + $0xf0] sm:$0xff] }
  0x6b   : > { %v1228_v46 = vadd.f32 %v1196_v6, %v1128_v40  ;;  %v1029_v49 = vadd.f32 %v997_v7, %v928_v41  ;;  %v698_v55 = vmul.f32 %v961_v19, %v1678_v47  ;;  %v399_v60 = vmul.f32 %v960_v54, %v1649_v32  ;;  %v1063_v54 = vld [vmem:[#allocation2 + $0xe1] sm:$0xff]  ;;  %v1064_v7 = vld [vmem:[#allocation2 + $0xf1] sm:$0xff] }
  0x6c   : > { %v829_v25 = vadd.f32 %v797_v43, %v729_v23  ;;  %v630_v52 = vadd.f32 %v598_v45, %v530_v44  ;;  %v998_v21 = vmul.f32 %v1699_v62, %v962_v22  ;;  %v499_v35 = vmul.f32 %v1060_v0, %v1659_v37  ;;  %v1164_v23 = vld [vmem:[#allocation2 + $0xf2] sm:$0xff] }
  0x6d   : > { %v1266_v63 = vadd.f32 %v1751_v61, %v1228_v46  ;;  %v1129_v51 = vadd.f32 %v1097_v48, %v1029_v49  ;;  %v1098_v33 = vmul.f32 %v1704_v3, %v1062_v34  ;;  %v798_v11 = vmul.f32 %v1061_v4, %v1685_v53 }
  0x6e   : > { %v929_v27 = vadd.f32 %v897_v12, %v829_v25  ;;  %v730_v2 = vadd.f32 %v698_v55, %v630_v52  ;;  %v1198_v14 = vmul.f32 %v1696_v59, %v1162_v31  ;;  %v531_v50 = vadd.f32 %v499_v35, %v399_v60 }
  0x6f   : > { %1298 = vst.msk [vmem:[%s1763_s28 + $0x60] sm:$0xff] %vm233_vm0, %v1266_v63  ;;  %v1229_v13 = vadd.f32 %v1197_v5, %v1129_v51  ;;  %v599_v30 = vmul.f32 %v1160_v1, %v1662_v38  ;;  %v898_v0 = vmul.f32 %v1161_v28, %v1690_v57  ;;  %v699_v17 = vmul.f32 %v962_v22, %v1678_v47  ;;  %v965_v51 = vld [vmem:[#allocation2 + $0xf8] sm:$0xff] }
  0x70   : > { %v1030_v42 = vadd.f32 %v998_v21, %v929_v27  ;;  %v830_v58 = vadd.f32 %v798_v11, %v730_v2  ;;  %v400_v56 = vmul.f32 %v961_v19, %v1649_v32  ;;  %v500_v10 = vmul.f32 %v1061_v4, %v1659_v37 }
  0x71   : > { %v1267_v18 = vadd.f32 %v1751_v61, %v1229_v13  ;;  %v631_v6 = vadd.f32 %v599_v30, %v531_v50  ;;  %v999_v15 = vmul.f32 %v1699_v62, %v963_v36  ;;  %v1099_v1 = vmul.f32 %v1704_v3, %v1063_v54  ;;  %v1165_v13 = vld [vmem:[#allocation2 + $0xfa] sm:$0xff] }
  0x72   : > { %v1130_v20 = vadd.f32 %v1098_v33, %v1030_v42  ;;  %v930_v24 = vadd.f32 %v898_v0, %v830_v58  ;;  %v799_v26 = vmul.f32 %v1062_v34, %v1685_v53  ;;  %v532_v16 = vadd.f32 %v500_v10, %v400_v56 }
  0x73   : > { %1299 = vst.msk [vmem:[%s1763_s28 + $0x68] sm:$0xff] %vm233_vm0, %v1267_v18  ;;  %v731_v9 = vadd.f32 %v699_v17, %v631_v6  ;;  %v600_v39 = vmul.f32 %v1161_v28, %v1662_v38  ;;  %v1199_v19 = vmul.f32 %v1696_v59, %v1163_v8  ;;  %v899_v4 = vmul.f32 %v1162_v31, %v1690_v57  ;;  %v966_v6 = vld [vmem:[#allocation2 + $0x108] sm:$0xff] }
  0x74   : > { %v1230_v40 = vadd.f32 %v1198_v14, %v1130_v20  ;;  %v1031_v41 = vadd.f32 %v999_v15, %v930_v24  ;;  %v700_v44 = vmul.f32 %v963_v36, %v1678_v47  ;;  %v401_v45 = vmul.f32 %v962_v22, %v1649_v32  ;;  %v1065_v22 = vld [vmem:[#allocation2 + $0xf9] sm:$0xff]  ;;  %v1066_v15 = vld [vmem:[#allocation2 + $0x109] sm:$0xff] }
  0x75   : > { %v831_v48 = vadd.f32 %v799_v26, %v731_v9  ;;  %v632_v43 = vadd.f32 %v600_v39, %v532_v16  ;;  %v1000_v28 = vmul.f32 %v1699_v62, %v964_v29  ;;  %v501_v5 = vmul.f32 %v1062_v34, %v1659_v37  ;;  %v1166_v9 = vld [vmem:[#allocation2 + $0x10a] sm:$0xff] }
  0x76   : > { %v1268_v46 = vadd.f32 %v1751_v61, %v1230_v40  ;;  %v1131_v49 = vadd.f32 %v1099_v1, %v1031_v41  ;;  %v1100_v25 = vmul.f32 %v1704_v3, %v1064_v7  ;;  %v800_v55 = vmul.f32 %v1063_v54, %v1685_v53 }
  0x77   : > { %v931_v12 = vadd.f32 %v899_v4, %v831_v48  ;;  %v732_v52 = vadd.f32 %v700_v44, %v632_v43  ;;  %v1200_v63 = vmul.f32 %v1696_v59, %v1164_v23  ;;  %v533_v21 = vadd.f32 %v501_v5, %v401_v45 }
  0x78   : > { %1300 = vst.msk [vmem:[%s1763_s28 + $0x70] sm:$0xff] %vm233_vm0, %v1268_v46  ;;  %v1231_v60 = vadd.f32 %v1199_v19, %v1131_v49  ;;  %v601_v35 = vmul.f32 %v1162_v31, %v1662_v38  ;;  %v900_v34 = vmul.f32 %v1163_v8, %v1690_v57  ;;  %v701_v2 = vmul.f32 %v964_v29, %v1678_v47  ;;  %v967_v49 = vld [vmem:[#allocation2 + $0x110] sm:$0xff] }
  0x79   : > { %v1032_v27 = vadd.f32 %v1000_v28, %v931_v12  ;;  %v832_v33 = vadd.f32 %v800_v55, %v732_v52  ;;  %v402_v50 = vmul.f32 %v963_v36, %v1649_v32  ;;  %v502_v30 = vmul.f32 %v1063_v54, %v1659_v37 }
  0x7a   : > { %v1269_v11 = vadd.f32 %v1751_v61, %v1231_v60  ;;  %v633_v14 = vadd.f32 %v601_v35, %v533_v21  ;;  %v1001_v0 = vmul.f32 %v1699_v62, %v965_v51  ;;  %v1101_v31 = vmul.f32 %v1704_v3, %v1065_v22  ;;  %v1167_v60 = vld [vmem:[#allocation2 + $0x112] sm:$0xff] }
  0x7b   : > { %v1132_v42 = vadd.f32 %v1100_v25, %v1032_v27  ;;  %v932_v58 = vadd.f32 %v900_v34, %v832_v33  ;;  %v801_v18 = vmul.f32 %v1064_v7, %v1685_v53  ;;  %v534_v56 = vadd.f32 %v502_v30, %v402_v50 }
  0x7c   : > { %1301 = vst.msk [vmem:[%s1763_s28 + $0x78] sm:$0xff] %vm233_vm0, %v1269_v11  ;;  %v733_v17 = vadd.f32 %v701_v2, %v633_v14  ;;  %v602_v10 = vmul.f32 %v1163_v8, %v1662_v38  ;;  %v1201_v36 = vmul.f32 %v1696_v59, %v1165_v13  ;;  %v901_v54 = vmul.f32 %v1164_v23, %v1690_v57  ;;  %v968_v14 = vld [vmem:[#allocation2 + $0x120] sm:$0xff] }
  0x7d   : > { %v1232_v20 = vadd.f32 %v1200_v63, %v1132_v42  ;;  %v1033_v24 = vadd.f32 %v1001_v0, %v932_v58  ;;  %v702_v16 = vmul.f32 %v965_v51, %v1678_v47  ;;  %v403_v39 = vmul.f32 %v964_v29, %v1649_v32  ;;  %v1067_v29 = vld [vmem:[#allocation2 + $0x111] sm:$0xff]  ;;  %v1068_v0 = vld [vmem:[#allocation2 + $0x121] sm:$0xff] }
  0x7e   : > { %v833_v1 = vadd.f32 %v801_v18, %v733_v17  ;;  %v634_v26 = vadd.f32 %v602_v10, %v534_v56  ;;  %v1002_v8 = vmul.f32 %v1699_v62, %v966_v6  ;;  %v503_v19 = vmul.f32 %v1064_v7, %v1659_v37  ;;  %v1990_v17 = vld [vmem:[#allocation2 + $0x122] sm:$0xff] }
  0x7f   : > { %v1270_v40 = vadd.f32 %v1751_v61, %v1232_v20  ;;  %v1133_v41 = vadd.f32 %v1101_v31, %v1033_v24  ;;  %v1102_v48 = vmul.f32 %v1704_v3, %v1066_v15  ;;  %v802_v44 = vmul.f32 %v1065_v22, %v1685_v53 }
  0x80   : > { %v933_v4 = vadd.f32 %v901_v54, %v833_v1  ;;  %v734_v43 = vadd.f32 %v702_v16, %v634_v26  ;;  %v1202_v46 = vmul.f32 %v1696_v59, %v1166_v9  ;;  %v535_v28 = vadd.f32 %v503_v19, %v403_v39 }
  0x81   : > { %1302 = vst.msk [vmem:[%s1763_s28 + $0x80] sm:$0xff] %vm233_vm0, %v1270_v40  ;;  %v1233_v45 = vadd.f32 %v1201_v36, %v1133_v41  ;;  %v603_v5 = vmul.f32 %v1164_v23, %v1662_v38  ;;  %v902_v7 = vmul.f32 %v1165_v13, %v1690_v57  ;;  %v703_v52 = vmul.f32 %v966_v6, %v1678_v47  ;;  %v1069_v41 = vld [vmem:[#allocation2 + $0x129] sm:$0xff] }
  0x82   : > { %v1034_v12 = vadd.f32 %v1002_v8, %v933_v4  ;;  %v834_v25 = vadd.f32 %v802_v44, %v734_v43  ;;  %v404_v21 = vmul.f32 %v965_v51, %v1649_v32  ;;  %v504_v35 = vmul.f32 %v1065_v22, %v1659_v37 }
  0x83   : > { %v1271_v55 = vadd.f32 %v1751_v61, %v1233_v45  ;;  %v635_v63 = vadd.f32 %v603_v5, %v535_v28  ;;  %v1003_v34 = vmul.f32 %v1699_v62, %v967_v49  ;;  %v1103_v23 = vmul.f32 %v1704_v3, %v1067_v29  ;;  %v1169_v45 = vld [vmem:[#allocation2 + $0x12a] sm:$0xff] }
  0x84   : > { %v1134_v27 = vadd.f32 %v1102_v48, %v1034_v12  ;;  %v934_v33 = vadd.f32 %v902_v7, %v834_v25  ;;  %v803_v11 = vmul.f32 %v1066_v15, %v1685_v53  ;;  %v536_v50 = vadd.f32 %v504_v35, %v404_v21 }
  0x85   : > { %1303 = vst.msk [vmem:[%s1763_s28 + $0x88] sm:$0xff] %vm233_vm0, %v1271_v55  ;;  %v735_v2 = vadd.f32 %v703_v52, %v635_v63  ;;  %v604_v30 = vmul.f32 %v1165_v13, %v1662_v38  ;;  %v1203_v51 = vmul.f32 %v1696_v59, %v1167_v60  ;;  %v903_v22 = vmul.f32 %v1166_v9, %v1690_v57  ;;  %v970_v63 = vld [vmem:[#allocation2 + $0x138] sm:$0xff] }
  0x86   : > { %v1234_v42 = vadd.f32 %v1202_v46, %v1134_v27  ;;  %v1035_v58 = vadd.f32 %v1003_v34, %v934_v33  ;;  %v704_v56 = vmul.f32 %v967_v49, %v1678_v47  ;;  %v405_v10 = vmul.f32 %v966_v6, %v1649_v32  ;;  %v969_v6 = vld [vmem:[#allocation2 + $0x128] sm:$0xff]  ;;  %v1070_v34 = vld [vmem:[#allocation2 + $0x139] sm:$0xff] }
  0x87   : > { %v835_v31 = vadd.f32 %v803_v11, %v735_v2  ;;  %v636_v18 = vadd.f32 %v604_v30, %v536_v50  ;;  %v1004_v13 = vmul.f32 %v1699_v62, %v968_v14  ;;  %v505_v36 = vmul.f32 %v1066_v15, %v1659_v37  ;;  %v2018_v2 = vld [vmem:[#allocation2 + $0x13a] sm:$0xff] }
  0x88   : > { %v1272_v20 = vadd.f32 %v1751_v61, %v1234_v42  ;;  %v1135_v24 = vadd.f32 %v1103_v23, %v1035_v58  ;;  %v1104_v1 = vmul.f32 %v1704_v3, %v1068_v0  ;;  %v804_v16 = vmul.f32 %v1067_v29, %v1685_v53 }
  0x89   : > { %v935_v54 = vadd.f32 %v903_v22, %v835_v31  ;;  %v736_v26 = vadd.f32 %v704_v56, %v636_v18  ;;  %v1204_v40 = vmul.f32 %v1696_v59, %v1990_v17  ;;  %v537_v8 = vadd.f32 %v505_v36, %v405_v10 }
  0x8a   : > { %1304 = vst.msk [vmem:[%s1763_s28 + $0x90] sm:$0xff] %vm233_vm0, %v1272_v20  ;;  %v1235_v39 = vadd.f32 %v1203_v51, %v1135_v24  ;;  %v605_v19 = vmul.f32 %v1166_v9, %v1662_v38  ;;  %v904_v48 = vmul.f32 %v1167_v60, %v1690_v57  ;;  %v705_v43 = vmul.f32 %v968_v14, %v1678_v47  ;;  %v971_v20 = vld [vmem:[#allocation2 + $0x140] sm:$0xff] }
  0x8b   : > { %v1036_v4 = vadd.f32 %v1004_v13, %v935_v54  ;;  %v836_v15 = vadd.f32 %v804_v16, %v736_v26  ;;  %v406_v28 = vmul.f32 %v967_v49, %v1649_v32  ;;  %v506_v5 = vmul.f32 %v1067_v29, %v1659_v37  ;;  %v1071_v24 = vld [vmem:[#allocation2 + $0x141] sm:$0xff] }
  0x8c   : > { %v1273_v44 = vadd.f32 %v1751_v61, %v1235_v39  ;;  %v637_v46 = vadd.f32 %v605_v19, %v537_v8  ;;  %v1005_v7 = vmul.f32 %v1699_v62, %v969_v6  ;;  %v1105_v9 = vmul.f32 %v1704_v3, %v1069_v41  ;;  %v1171_v39 = vld [vmem:[#allocation2 + $0x142] sm:$0xff] }
  0x8d   : > { %v1136_v12 = vadd.f32 %v1104_v1, %v1036_v4  ;;  %v936_v25 = vadd.f32 %v904_v48, %v836_v15  ;;  %v805_v55 = vmul.f32 %v1068_v0, %v1685_v53  ;;  %v538_v21 = vadd.f32 %v506_v5, %v406_v28 }
  0x8e   : > { %1305 = vst.msk [vmem:[%s1763_s28 + $0x98] sm:$0xff] %vm233_vm0, %v1273_v44  ;;  %v737_v52 = vadd.f32 %v705_v43, %v637_v46  ;;  %v606_v35 = vmul.f32 %v1167_v60, %v1662_v38  ;;  %v1205_v49 = vmul.f32 %v1696_v59, %v1169_v45  ;;  %v905_v29 = vmul.f32 %v1990_v17, %v1690_v57  ;;  %v972_v46 = vld [vmem:[#allocation2 + $0x150] sm:$0xff] }
  0x8f   : > { %v1236_v27 = vadd.f32 %v1204_v40, %v1136_v12  ;;  %v1037_v33 = vadd.f32 %v1005_v7, %v936_v25  ;;  %v706_v50 = vmul.f32 %v969_v6, %v1678_v47  ;;  %v407_v30 = vmul.f32 %v968_v14, %v1649_v32  ;;  %v2032_v14 = vld [vmem:[%s2166_s1 + $0x8] ss:$0 sm:$0xff]  ;;  %v1072_v7 = vld [vmem:[#allocation2 + $0x151] sm:$0xff] }
  0x90   : > { %v837_v23 = vadd.f32 %v805_v55, %v737_v52  ;;  %v638_v11 = vadd.f32 %v606_v35, %v538_v21  ;;  %v1006_v58 = vmul.f32 %v1699_v62, %v970_v63  ;;  %v507_v59 = vmul.f32 %v1068_v0, %v1659_v37  ;;  %v2052_v52 = vld [vmem:[#allocation2 + $0x152] sm:$0xff] }
  0x91   : > { %v1274_v42 = vadd.f32 %v1751_v61, %v1236_v27  ;;  %v1137_v60 = vadd.f32 %v1105_v9, %v1037_v33  ;;  %v1106_v22 = vmul.f32 %v1704_v3, %v1070_v34  ;;  %v806_v18 = vmul.f32 %v1069_v41, %v1685_v53 }
  0x92   : > { %v937_v51 = vadd.f32 %v905_v29, %v837_v23  ;;  %v738_v31 = vadd.f32 %v706_v50, %v638_v11  ;;  %v1206_v10 = vmul.f32 %v2032_v14, %v2018_v2  ;;  %v539_v0 = vadd.f32 %v507_v59, %v407_v30 }
  0x93   : > { %1306 = vst.msk [vmem:[%s1763_s28 + $0xa0] sm:$0xff] %vm233_vm0, %v1274_v42  ;;  %v1237_v56 = vadd.f32 %v1205_v49, %v1137_v60  ;;  %v607_v13 = vmul.f32 %v1990_v17, %v1662_v38  ;;  %v906_v1 = vmul.f32 %v1169_v45, %v1690_v57  ;;  %v707_v26 = vmul.f32 %v970_v63, %v1678_v47  ;;  %v1073_v60 = vld [vmem:[#allocation2 + $0x159] sm:$0xff] }
  0x94   : > { %v1038_v36 = vadd.f32 %v1006_v58, %v937_v51  ;;  %v838_v54 = vadd.f32 %v806_v18, %v738_v31  ;;  %v408_v8 = vmul.f32 %v969_v6, %v1649_v32  ;;  %v508_v19 = vmul.f32 %v1069_v41, %v1659_v37 }
  0x95   : > { %v1275_v16 = vadd.f32 %v1751_v61, %v1237_v56  ;;  %v639_v40 = vadd.f32 %v607_v13, %v539_v0  ;;  %v1007_v48 = vmul.f32 %v1699_v62, %v971_v20  ;;  %v1107_v17 = vmul.f32 %v1704_v3, %v1071_v24  ;;  %v1173_v56 = vld [vmem:[#allocation2 + $0x15a] sm:$0xff] }
  0x96   : > { %v1138_v4 = vadd.f32 %v1106_v22, %v1038_v36  ;;  %v938_v15 = vadd.f32 %v906_v1, %v838_v54  ;;  %v807_v44 = vmul.f32 %v1070_v34, %v1685_v53  ;;  %v540_v28 = vadd.f32 %v508_v19, %v408_v8 }
  0x97   : > { %1307 = vst.msk [vmem:[%s1763_s28 + $0xa8] sm:$0xff] %vm233_vm0, %v1275_v16  ;;  %v739_v43 = vadd.f32 %v707_v26, %v639_v40  ;;  %v608_v5 = vmul.f32 %v1169_v45, %v1662_v38  ;;  %v1207_v6 = vmul.f32 %v2032_v14, %v1171_v39  ;;  %v907_v41 = vmul.f32 %v2018_v2, %v1690_v57  ;;  %v974_v40 = vld [vmem:[#allocation2 + $0x168] sm:$0xff] }
  0x98   : > { %v1238_v12 = vadd.f32 %v1206_v10, %v1138_v4  ;;  %v1039_v25 = vadd.f32 %v1007_v48, %v938_v15  ;;  %v708_v21 = vmul.f32 %v971_v20, %v1678_v47  ;;  %v409_v35 = vmul.f32 %v970_v63, %v1649_v32  ;;  %v973_v63 = vld [vmem:[#allocation2 + $0x158] sm:$0xff]  ;;  %v1074_v15 = vld [vmem:[#allocation2 + $0x169] sm:$0xff] }
  0x99   : > { %v839_v9 = vadd.f32 %v807_v44, %v739_v43  ;;  %v640_v55 = vadd.f32 %v608_v5, %v540_v28  ;;  %v1008_v33 = vmul.f32 %v1699_v62, %v972_v46  ;;  %v509_v49 = vmul.f32 %v1070_v34, %v1659_v37 }
  0x9a   : > { %v1276_v27 = vadd.f32 %v1751_v61, %v1238_v12  ;;  %v1139_v45 = vadd.f32 %v1107_v17, %v1039_v25  ;;  %v1108_v23 = vmul.f32 %v1704_v3, %v1072_v7  ;;  %v808_v50 = vmul.f32 %v1071_v24, %v1685_v53  ;;  %v1174_v17 = vld [vmem:[#allocation2 + $0x16a] sm:$0xff] }
  0x9b   : > { %v939_v29 = vadd.f32 %v907_v41, %v839_v9  ;;  %v740_v11 = vadd.f32 %v708_v21, %v640_v55  ;;  %v1208_v42 = vmul.f32 %v2032_v14, %v2052_v52  ;;  %v541_v58 = vadd.f32 %v509_v49, %v409_v35 }
  0x9c   : > { %1308 = vst.msk [vmem:[%s1763_s28 + $0xb0] sm:$0xff] %vm233_vm0, %v1276_v27  ;;  %v1239_v30 = vadd.f32 %v1207_v6, %v1139_v45  ;;  %v609_v59 = vmul.f32 %v2018_v2, %v1662_v38  ;;  %v908_v22 = vmul.f32 %v1171_v39, %v1690_v57  ;;  %v709_v31 = vmul.f32 %v972_v46, %v1678_v47  ;;  %v975_v27 = vld [vmem:[#allocation2 + $0x170] sm:$0xff] }
  0x9d   : > { %v1040_v34 = vadd.f32 %v1008_v33, %v939_v29  ;;  %v840_v51 = vadd.f32 %v808_v50, %v740_v11  ;;  %v410_v0 = vmul.f32 %v971_v20, %v1649_v32  ;;  %v510_v13 = vmul.f32 %v1071_v24, %v1659_v37  ;;  %v1075_v45 = vld [vmem:[#allocation2 + $0x171] sm:$0xff] }
  0x9e   : > { %v1277_v18 = vadd.f32 %v1751_v61, %v1239_v30  ;;  %v641_v10 = vadd.f32 %v609_v59, %v541_v58  ;;  %v1009_v1 = vmul.f32 %v1699_v62, %v973_v63  ;;  %v1109_v2 = vmul.f32 %v1704_v3, %v1073_v60  ;;  %v1175_v30 = vld [vmem:[#allocation2 + $0x172] sm:$0xff] }
  0x9f   : > { %v1140_v36 = vadd.f32 %v1108_v23, %v1040_v34  ;;  %v940_v54 = vadd.f32 %v908_v22, %v840_v51  ;;  %v809_v16 = vmul.f32 %v1072_v7, %v1685_v53  ;;  %v542_v8 = vadd.f32 %v510_v13, %v410_v0 }
  0xa0   : > { %1309 = vst.msk [vmem:[%s1763_s28 + $0xb8] sm:$0xff] %vm233_vm0, %v1277_v18  ;;  %v741_v26 = vadd.f32 %v709_v31, %v641_v10  ;;  %v610_v61 = vmul.f32 %v1171_v39, %v1662_v38  ;;  %v1209_v20 = vmul.f32 %v2032_v14, %v1173_v56  ;;  %v909_v24 = vmul.f32 %v2052_v52, %v1690_v57  ;;  %v2086_v39 = vld [vmem:[%s2167_s2] ss:$0 sm:$0xff] }
  0xa1   : > { %v1240_v19 = vadd.f32 %v1208_v42, %v1140_v36  ;;  %v1041_v4 = vadd.f32 %v1009_v1, %v940_v54  ;;  %v710_v44 = vmul.f32 %v973_v63, %v1678_v47  ;;  %v411_v28 = vmul.f32 %v972_v46, %v1649_v32  ;;  %v976_v10 = vld [vmem:[#allocation2 + $0x180] sm:$0xff] }
  0xa2   : > { %v841_v48 = vadd.f32 %v809_v16, %v741_v26  ;;  %v642_v43 = vadd.f32 %v610_v61, %v542_v8  ;;  %v1010_v25 = vmul.f32 %v1699_v62, %v974_v40  ;;  %v511_v6 = vmul.f32 %v1072_v7, %v1659_v37  ;;  %v1076_v1 = vld [vmem:[#allocation2 + $0x181] sm:$0xff] }
  0xa3   : > { %v1278_v5 = vadd.f32 %v2086_v39, %v1240_v19  ;;  %v1141_v12 = vadd.f32 %v1109_v2, %v1041_v4  ;;  %v1110_v9 = vmul.f32 %v1704_v3, %v1074_v15  ;;  %v810_v21 = vmul.f32 %v1073_v60, %v1685_v53 }
  0xa4   : > { %v941_v41 = vadd.f32 %v909_v24, %v841_v48  ;;  %v742_v55 = vadd.f32 %v710_v44, %v642_v43  ;;  %v1210_v35 = vmul.f32 %v2032_v14, %v1174_v17  ;;  %v543_v33 = vadd.f32 %v511_v6, %v411_v28 }
  0xa5   : > { %1310 = vst.msk [vmem:[%s1763_s28 + $0xc0] sm:$0xff] %vm233_vm0, %v1278_v5  ;;  %v1241_v46 = vadd.f32 %v1209_v20, %v1141_v12  ;;  %v611_v49 = vmul.f32 %v2052_v52, %v1662_v38  ;;  %v910_v23 = vmul.f32 %v1173_v56, %v1690_v57  ;;  %v711_v11 = vmul.f32 %v974_v40, %v1678_v47  ;;  %v977_v5 = vld [vmem:[#allocation2 + $0x188] sm:$0xff] }
  0xa6   : > { %v1042_v29 = vadd.f32 %v1010_v25, %v941_v41  ;;  %v842_v7 = vadd.f32 %v810_v21, %v742_v55  ;;  %v412_v58 = vmul.f32 %v973_v63, %v1649_v32  ;;  %v512_v59 = vmul.f32 %v1073_v60, %v1659_v37  ;;  %v1077_v21 = vld [vmem:[#allocation2 + $0x189] sm:$0xff] }
  0xa7   : > { %v1279_v50 = vadd.f32 %v2086_v39, %v1241_v46  ;;  %v643_v42 = vadd.f32 %v611_v49, %v543_v33  ;;  %v1011_v22 = vmul.f32 %v1699_v62, %v975_v27  ;;  %v1111_v52 = vmul.f32 %v1704_v3, %v1075_v45 }
  0xa8   : > { %v1142_v34 = vadd.f32 %v1110_v9, %v1042_v29  ;;  %v942_v51 = vadd.f32 %v910_v23, %v842_v7  ;;  %v811_v18 = vmul.f32 %v1074_v15, %v1685_v53  ;;  %v544_v0 = vadd.f32 %v512_v59, %v412_v58  ;;  %v978_v23 = vld [vmem:[#allocation2 + $0x198] sm:$0xff] }
  0xa9   : > { %1311 = vst.msk [vmem:[%s1763_s28 + $0xc8] sm:$0xff] %vm233_vm0, %v1279_v50  ;;  %v743_v31 = vadd.f32 %v711_v11, %v643_v42  ;;  %v612_v13 = vmul.f32 %v1173_v56, %v1662_v38  ;;  %v1211_v63 = vmul.f32 %v2032_v14, %v1175_v30  ;;  %v911_v60 = vmul.f32 %v1174_v17, %v1690_v57  ;;  %v1176_v56 = vld [vmem:[#allocation2 + $0x182] sm:$0xff]  ;;  %v1177_v11 = vld [vmem:[#allocation2 + $0x18a] sm:$0xff] }
  0xaa   : > { %v1242_v36 = vadd.f32 %v1210_v35, %v1142_v34  ;;  %v1043_v54 = vadd.f32 %v1011_v22, %v942_v51  ;;  %v712_v16 = vmul.f32 %v975_v27, %v1678_v47  ;;  %v413_v8 = vmul.f32 %v974_v40, %v1649_v32  ;;  %v1078_v22 = vld [vmem:[#allocation2 + $0x199] sm:$0xff] }
  0xab   : > { %v843_v2 = vadd.f32 %v811_v18, %v743_v31  ;;  %v644_v26 = vadd.f32 %v612_v13, %v544_v0  ;;  %v1012_v4 = vmul.f32 %v1699_v62, %v976_v10  ;;  %v513_v20 = vmul.f32 %v1074_v15, %v1659_v37 }
  0xac   : > { %v1280_v61 = vadd.f32 %v2086_v39, %v1242_v36  ;;  %v1143_v19 = vadd.f32 %v1111_v52, %v1043_v54  ;;  %v1112_v48 = vmul.f32 %v1704_v3, %v1076_v1  ;;  %v812_v44 = vmul.f32 %v1075_v45, %v1685_v53  ;;  %v1178_v54 = vld [vmem:[#allocation2 + $0x19a] sm:$0xff] }
  0xad   : > { %v943_v24 = vadd.f32 %v911_v60, %v843_v2  ;;  %v744_v43 = vadd.f32 %v712_v16, %v644_v26  ;;  %v545_v12 = vadd.f32 %v513_v20, %v413_v8  ;;  %v613_v40 = vmul.f32 %v1174_v17, %v1662_v38  ;;  %v1079_v16 = vld [vmem:[#allocation2 + $0x1a1] sm:$0xff] }
  0xae   : > { %1312 = vst.msk [vmem:[%s1763_s28 + $0xd0] sm:$0xff] %vm233_vm0, %v1280_v61  ;;  %v1243_v28 = vadd.f32 %v1211_v63, %v1143_v19  ;;  %v713_v25 = vmul.f32 %v976_v10, %v1678_v47  ;;  %v1212_v41 = vmul.f32 %v2032_v14, %v1176_v56  ;;  %v912_v9 = vmul.f32 %v1175_v30, %v1690_v57  ;;  %v1179_v19 = vld [vmem:[#allocation2 + $0x1a2] sm:$0xff] }
  0xaf   : > { %v1044_v6 = vadd.f32 %v1012_v4, %v943_v24  ;;  %v844_v15 = vadd.f32 %v812_v44, %v744_v43  ;;  %v645_v46 = vadd.f32 %v613_v40, %v545_v12  ;;  %v414_v35 = vmul.f32 %v975_v27, %v1649_v32 }
  0xb0   : > { %v1281_v55 = vadd.f32 %v2086_v39, %v1243_v28  ;;  %v514_v33 = vmul.f32 %v1075_v45, %v1659_v37  ;;  %v1013_v17 = vmul.f32 %v1699_v62, %v977_v5  ;;  %v813_v7 = vmul.f32 %v1076_v1, %v1685_v53 }
  0xb1   : > { %v1144_v49 = vadd.f32 %v1112_v48, %v1044_v6  ;;  %v944_v29 = vadd.f32 %v912_v9, %v844_v15  ;;  %v745_v50 = vadd.f32 %v713_v25, %v645_v46  ;;  %v614_v58 = vmul.f32 %v1175_v30, %v1662_v38  ;;  %v979_v38 = vld [vmem:[#allocation2 + $0x1a0] sm:$0xff] }
  0xb2   : > { %1313 = vst.msk [vmem:[%s1763_s28 + $0xd8] sm:$0xff] %vm233_vm0, %v1281_v55  ;;  %v546_v42 = vadd.f32 %v514_v33, %v414_v35  ;;  %v714_v59 = vmul.f32 %v977_v5, %v1678_v47  ;;  %v1113_v37 = vmul.f32 %v1704_v3, %v1077_v21  ;;  %v913_v34 = vmul.f32 %v1176_v56, %v1690_v57 }
  0xb3   : > { %v1244_v32 = vadd.f32 %v1212_v41, %v1144_v49  ;;  %v1045_v27 = vadd.f32 %v1013_v17, %v944_v29  ;;  %v845_v45 = vadd.f32 %v813_v7, %v745_v50  ;;  %v1014_v51 = vmul.f32 %v1699_v62, %v978_v23 }
  0xb4   : > { %v646_v52 = vadd.f32 %v614_v58, %v546_v42  ;;  %v1213_v10 = vmul.f32 %v2032_v14, %v1177_v11  ;;  %v814_v0 = vmul.f32 %v1077_v21, %v1685_v53  ;;  %v1114_v36 = vmul.f32 %v1704_v3, %v1078_v22 }
  0xb5   : > { %v1282_v31 = vadd.f32 %v2086_v39, %v1244_v32  ;;  %v1145_v18 = vadd.f32 %v1113_v37, %v1045_v27  ;;  %v945_v30 = vadd.f32 %v913_v34, %v845_v45  ;;  %v914_v1 = vmul.f32 %v1177_v11, %v1690_v57 }
  0xb6   : > { %v746_v47 = vadd.f32 %v714_v59, %v646_v52  ;;  %v1015_v2 = vmul.f32 %v1699_v62, %v979_v38  ;;  %v1214_v53 = vmul.f32 %v2032_v14, %v1178_v54  ;;  %v1115_v20 = vmul.f32 %v1704_v3, %v1079_v16 }
  0xb7   : > { %1314 = vst.msk [vmem:[%s1763_s28 + $0xe0] sm:$0xff] %vm233_vm0, %v1282_v31  ;;  %v1245_v13 = vadd.f32 %v1213_v10, %v1145_v18  ;;  %v1046_v63 = vadd.f32 %v1014_v51, %v945_v30  ;;  %v1215_v62 = vmul.f32 %v2032_v14, %v1179_v19 }
  0xb8   : > { %v846_v60 = vadd.f32 %v814_v0, %v746_v47 }
  0xb9   : > { %v1283_v26 = vadd.f32 %v2086_v39, %v1245_v13  ;;  %v1146_v8 = vadd.f32 %v1114_v36, %v1046_v63 }
  0xba   : > { %v946_v61 = vadd.f32 %v914_v1, %v846_v60 }
  0xbb   : > { %1315 = vst.msk [vmem:[%s1763_s28 + $0xe8] sm:$0xff] %vm233_vm0, %v1283_v26  ;;  %v1246_v4 = vadd.f32 %v1214_v53, %v1146_v8 }
  0xbc   : > { %v1047_v56 = vadd.f32 %v1015_v2, %v946_v61 }
  0xbd   : > { %v1284_v24 = vadd.f32 %v2086_v39, %v1246_v4 }
  0xbe   : > { %v1147_v57 = vadd.f32 %v1115_v20, %v1047_v56 }
  0xbf   : > { %1316 = vst.msk [vmem:[%s1763_s28 + $0xf0] sm:$0xff] %vm233_vm0, %v1284_v24 }
  0xc0   : > { %v1247_v48 = vadd.f32 %v1215_v62, %v1147_v57 }
  0xc2   : > { %v1285_v43 = vadd.f32 %v2086_v39, %v1247_v48 }
  0xc4   : > { %1317 = vst.msk [vmem:[%s1763_s28 + $0xf8] sm:$0xff] %vm233_vm0, %v1285_v43 }
  0xc5 PF: > { %s13_s14 = sadd.s32 1, %s1495_s14   ;;  %s2169_s12 = smov %s1491_s13 }
  0xc6   : > { %p10_p5 = scmp.ge.s32.totalorder %s13_s14, 4   ;;  %s2170_s13 = smov %s2172_s15 }
  0xc8   :  { %12 = sbr.rel (!%p10_p5) target bundleno = 2 (0x2), region = 71 }

</bundles_post_ra>
